<compile_context>
chip_gen: v5e
topology: v5e:2x2
jax: 0.10.0
libtpu: 0.0.40
codegen_flags: <defaults>
</compile_context>

<pallas_src>
import math
from functools import partial

import jax
import jax.numpy as jnp
from jax.experimental import pallas as pl
from jax.experimental.pallas import tpu as pltpu


_VMEM = pl.BlockSpec(memory_space=pltpu.MemorySpace.VMEM)


def _round_up(x, m):
    return (x + m - 1) // m * m


# ------------------------------------------------------------------ in-kernel helpers

def _norm2(x, is_actor, inv_h, eps=1e-5):
    """Two independent LayerNorms (no affine; affines folded into downstream
    weights) over the actor / critic lane halves of a fused [B, 2H] array."""
    xl = jnp.where(is_actor, x, 0.0)
    xr = x - xl
    mu = jnp.where(is_actor,
                   jnp.sum(xl, axis=-1, keepdims=True),
                   jnp.sum(xr, axis=-1, keepdims=True)) * inv_h
    d = x - mu
    dl = jnp.where(is_actor, d, 0.0)
    dr = d - dl
    var = jnp.where(is_actor,
                    jnp.sum(dl * dl, axis=-1, keepdims=True),
                    jnp.sum(dr * dr, axis=-1, keepdims=True)) * inv_h
    return d * jax.lax.rsqrt(var + eps)


# ------------------------------------------------------------------ fused kernel

def _acc_agent_kernel(x_ref, h_ref, mask_ref, wa_ref, wb_ref, v_ref,
                      packed_ref, state_ref,
                      *, in_fused, H, A, C, logit_off, mm_dtype):
    f32 = jnp.float32
    H2 = 2 * H
    B = x_ref.shape[0]

    lane = jax.lax.broadcasted_iota(jnp.int32, (B, H2), 1)   # hoisted, reused
    is_actor = lane < H
    inv_h = 1.0 / H

    # ---- weight / bias views (all sublane / lane slices tile-aligned) ----
    W1 = wa_ref[0:in_fused, :]                       # [in_fused, 2H]
    W2 = wa_ref[in_fused:in_fused + H2, :]           # [2H, 2H] block-diag
    WHd = wa_ref[in_fused + H2:in_fused + 2 * H2, :]  # [2H, 2H] fused heads
    WI = wb_ref[0:H2, :]                             # [2H, 6H] GRU x-path gates
    WH = wb_ref[H2:2 * H2, :]                        # [2H, 6H] GRU h-path gates

    b1 = v_ref[0:1, 0:H2]
    b2 = v_ref[1:2, 0:H2]
    bgx = v_ref[2:3, :]
    bgh = v_ref[3:4, :]
    bhd = v_ref[4:5, 0:H2]

    # ---- fused 2-layer MLP encoder (fc -> ReLU -> LN, affines pre-folded) ----
    x = jnp.maximum(
        jnp.dot(x_ref[...].astype(mm_dtype), W1, preferred_element_type=f32) + b1,
        0.0)
    x = _norm2(x, is_actor, inv_h)
    x = jnp.maximum(
        jnp.dot(x.astype(mm_dtype), W2, preferred_element_type=f32) + b2, 0.0)
    x = _norm2(x, is_actor, inv_h)

    # ---- masked fused GRU cell (gate order r|z|n; actor|critic within each) ----
    h = h_ref[...] * mask_ref[...]                   # mask applied once to [B,2H]
    gx = jnp.dot(x.astype(mm_dtype), WI, preferred_element_type=f32) + bgx
    gh = jnp.dot(h.astype(mm_dtype), WH, preferred_element_type=f32) + bgh
    r = jax.nn.sigmoid(gx[:, 0:H2] + gh[:, 0:H2])
    z = jax.nn.sigmoid(gx[:, H2:2 * H2] + gh[:, H2:2 * H2])
    n = jnp.tanh(gx[:, 2 * H2:3 * H2] + r * gh[:, 2 * H2:3 * H2])
    h_new = (1.0 - z) * n + z * h
    state_ref[...] = h_new                           # raw GRU state, already fused

    # ---- fused actor+critic heads (LN3 affine folded into head weights) ----
    hn = _norm2(h_new, is_actor, inv_h)
    heads = jnp.dot(hn.astype(mm_dtype), WHd, preferred_element_type=f32) + bhd
    # heads lanes: [2:2+C]=comm_mean, [2+C]=act_value, [3+C]=comm_value,
    #              [logit_off:logit_off+A]=env-action logits, rest zero.

    # ---- deterministic Categorical: argmax + logp(argmax), over logit lanes ----
    is_logit = (lane >= logit_off) & (lane < logit_off + A)
    logit_m = jnp.where(is_logit, heads, -jnp.inf)
    m = jnp.max(logit_m, axis=-1, keepdims=True)
    sum_exp = jnp.sum(jnp.exp(jnp.where(is_logit, heads - m, -jnp.inf)),
                      axis=-1, keepdims=True)
    action = jnp.min(jnp.where(logit_m >= m, lane - logit_off, A),
                     axis=-1, keepdims=True).astype(f32)   # lowest index on ties
    alogp = -jnp.log(sum_exp)                               # m - logsumexp

    # ---- lane-dense packed output (single full-width store) ----
    packed_ref[...] = jnp.where(lane == 0, action,
                      jnp.where(lane == 1, alogp,
                      jnp.where(lane < logit_off, heads, 0.0)))


# ------------------------------------------------------------------ wrapper

def _forward_impl(obs, shared_obs, act_rnn_states, critic_rnn_states, masks,
                  slab_a, slab_b, vslab, clogp_const, *, dims, mm_dtype):
    (obs_dim, sobs_dim, off_c, in_fused, H, A, C, logit_off) = dims
    B = obs.shape[0]
    H2 = 2 * H

    # recurrent_N assumed == 1
    h_fused = jnp.concatenate(
        [act_rnn_states[:, 0, :], critic_rnn_states[:, 0, :]], axis=-1)
    obs_p = jnp.pad(obs, ((0, 0), (0, off_c - obs_dim)))
    sobs_p = jnp.pad(shared_obs, ((0, 0), (0, in_fused - off_c - sobs_dim)))
    x_fused = jnp.concatenate([obs_p, sobs_p], axis=-1)

    kernel = partial(_acc_agent_kernel, in_fused=in_fused, H=H, A=A, C=C,
                     logit_off=logit_off, mm_dtype=mm_dtype)
    packed, states = pl.pallas_call(
        kernel,
        out_shape=(jax.ShapeDtypeStruct((B, H2), jnp.float32),
                   jax.ShapeDtypeStruct((B, H2), jnp.float32)),
        in_specs=[_VMEM] * 6,
        out_specs=(_VMEM, _VMEM),
    )(x_fused, h_fused, masks, slab_a, slab_b, vslab)

    actions = packed[:, 0:1].astype(jnp.int32)
    action_log_probs = packed[:, 1:2]
    comm_actions = packed[:, 2:2 + C]
    act_values = packed[:, 2 + C:3 + C]
    comm_values = packed[:, 3 + C:4 + C]
    # log N(mean | mean, std): batch-independent constant, hoisted out of kernel
    comm_action_log_probs = jnp.broadcast_to(
        clogp_const.astype(jnp.float32), (B, 1))
    act_rnn_states_new = states[:, :H][:, None, :]
    critic_rnn_states_new = states[:, H:][:, None, :]
    return (act_values, comm_values, actions, action_log_probs,
            comm_actions, comm_action_log_probs,
            act_rnn_states_new, critic_rnn_states_new)


# ------------------------------------------------------------------ param init / folding / packing

def _init_trunk_raw(key, in_dim, H):
    ks = jax.random.split(key, 16)
    nrm = lambda k, shape, s: s * jax.random.normal(k, shape, jnp.float32)
    return dict(
        w1=nrm(ks[0], (in_dim, H), 0.1), b1=nrm(ks[1], (H,), 0.01),
        g1=1.0 + nrm(ks[2], (H,), 0.05), be1=nrm(ks[3], (H,), 0.05),
        w2=nrm(ks[4], (H, H), 0.1), b2=nrm(ks[5], (H,), 0.01),
        g2=1.0 + nrm(ks[6], (H,), 0.05), be2=nrm(ks[7], (H,), 0.05),
        wih_r=nrm(ks[8], (H, H), 0.1), wih_z=nrm(ks[9], (H, H), 0.1),
        wih_n=nrm(ks[10], (H, H), 0.1),
        whh_r=nrm(ks[11], (H, H), 0.1), whh_z=nrm(ks[12], (H, H), 0.1),
        whh_n=nrm(ks[13], (H, H), 0.1),
        bih_r=jnp.zeros((H,)), bih_z=jnp.zeros((H,)), bih_n=jnp.zeros((H,)),
        bhh_r=jnp.zeros((H,)), bhh_z=jnp.zeros((H,)), bhh_n=jnp.zeros((H,)),
        g3=1.0 + nrm(ks[14], (H,), 0.05), be3=nrm(ks[15], (H,), 0.05),
    )


def _fold_trunk(p):
    """Fold LN1 affine into w2/b2 and LN2 affine into the GRU x-path weights."""
    return dict(
        w1=p["w1"], b1=p["b1"],
        w2=p["g1"][:, None] * p["w2"], b2=p["b2"] + p["be1"] @ p["w2"],
        wir=p["g2"][:, None] * p["wih_r"], bir=p["bih_r"] + p["be2"] @ p["wih_r"],
        wiz=p["g2"][:, None] * p["wih_z"], biz=p["bih_z"] + p["be2"] @ p["wih_z"],
        win=p["g2"][:, None] * p["wih_n"], bin=p["bih_n"] + p["be2"] @ p["wih_n"],
        whr=p["whh_r"], whz=p["whh_z"], whn=p["whh_n"],
        bhr=p["bhh_r"], bhz=p["bhh_z"], bhn=p["bhh_n"],
        g3=p["g3"], be3=p["be3"],
    )


def _pack_fused(ta, tc, actor_heads, critic_heads, *, obs_dim, sobs_dim, off_c,
                in_fused, H, A, C, logit_off, mm_dtype):
    """Build the 3 block-diagonal fused slabs (2 matmul-dtype, 1 f32 bias)."""
    f32 = jnp.float32
    H2 = 2 * H

    # --- slab A: [in_fused + 2*2H, 2H] = W1 ; W2 ; fused head weights ---
    W1 = jnp.zeros((in_fused, H2), f32)
    W1 = W1.at[0:obs_dim, 0:H].set(ta["w1"])
    W1 = W1.at[off_c:off_c + sobs_dim, H:H2].set(tc["w1"])
    W2 = jnp.zeros((H2, H2), f32)
    W2 = W2.at[0:H, 0:H].set(ta["w2"]).at[H:H2, H:H2].set(tc["w2"])

    wa, ba, wc, bc = actor_heads
    wav, bav, wcv, bcv = critic_heads
    waf = ta["g3"][:, None] * wa; baf = ba + ta["be3"] @ wa      # env-action logits
    wcf = ta["g3"][:, None] * wc; bcf = bc + ta["be3"] @ wc      # comm mean
    wavf = tc["g3"][:, None] * wav; bavf = bav + tc["be3"] @ wav  # act value
    wcvf = tc["g3"][:, None] * wcv; bcvf = bcv + tc["be3"] @ wcv  # comm value

    HWd = jnp.zeros((H2, H2), f32)
    HWd = HWd.at[0:H, 2:2 + C].set(wcf)
    HWd = HWd.at[0:H, logit_off:logit_off + A].set(waf)
    HWd = HWd.at[H:H2, 2 + C:3 + C].set(wavf)
    HWd = HWd.at[H:H2, 3 + C:4 + C].set(wcvf)
    slab_a = jnp.concatenate([W1, W2, HWd], axis=0).astype(mm_dtype)

    # --- slab B: [2*2H, 3*2H] = GRU x-path gates ; GRU h-path gates ---
    WI = jnp.zeros((H2, 3 * H2), f32)
    WH = jnp.zeros((H2, 3 * H2), f32)
    gates = [(ta["wir"], tc["wir"], ta["whr"], tc["whr"]),
             (ta["wiz"], tc["wiz"], ta["whz"], tc["whz"]),
             (ta["win"], tc["win"], ta["whn"], tc["whn"])]
    for g, (wia, wic, wha, whc) in enumerate(gates):
        WI = WI.at[0:H, g * H2:g * H2 + H].set(wia)
        WI = WI.at[H:H2, g * H2 + H:(g + 1) * H2].set(wic)
        WH = WH.at[0:H, g * H2:g * H2 + H].set(wha)
        WH = WH.at[H:H2, g * H2 + H:(g + 1) * H2].set(whc)
    slab_b = jnp.concatenate([WI, WH], axis=0).astype(mm_dtype)

    # --- bias slab (f32): [8, 3*2H] = b1 ; b2 ; gru x bias ; gru h bias ; head bias ---
    V = jnp.zeros((8, 3 * H2), f32)
    V = V.at[0, 0:H].set(ta["b1"]).at[0, H:H2].set(tc["b1"])
    V = V.at[1, 0:H].set(ta["b2"]).at[1, H:H2].set(tc["b2"])
    gbias = [(ta["bir"], tc["bir"], ta["bhr"], tc["bhr"]),
             (ta["biz"], tc["biz"], ta["bhz"], tc["bhz"]),
             (ta["bin"], tc["bin"], ta["bhn"], tc["bhn"])]
    for g, (bia, bic, bha, bhc) in enumerate(gbias):
        V = V.at[2, g * H2:g * H2 + H].set(bia)
        V = V.at[2, g * H2 + H:(g + 1) * H2].set(bic)
        V = V.at[3, g * H2:g * H2 + H].set(bha)
        V = V.at[3, g * H2 + H:(g + 1) * H2].set(bhc)
    V = V.at[4, 2:2 + C].set(bcf)
    V = V.at[4, logit_off:logit_off + A].set(baf)
    V = V.at[4, 2 + C:3 + C].set(bavf)
    V = V.at[4, 3 + C:4 + C].set(bcvf)
    return slab_a, slab_b, V


# ------------------------------------------------------------------ agent

class ACC_Agent:
    """JAX/Pallas re-implementation of ACC_Agent.forward (deterministic path)."""

    def __init__(self, key, obs_dim, shared_obs_dim, act_dim,
                 comm_dim=16, hidden=64, matmul_dtype=jnp.bfloat16):
        H = hidden
        assert (2 * H) % 128 == 0, "hidden must be a multiple of 64"
        logit_off = _round_up(4 + comm_dim, 8)
        assert logit_off + act_dim <= 2 * H, "act/comm dims exceed packed width"
        off_c = _round_up(obs_dim, 8)
        in_fused = _round_up(off_c + shared_obs_dim, 128)

        self.act_dim, self.comm_dim, self.hidden = act_dim, comm_dim, hidden

        ka, kc, kh = jax.random.split(key, 3)
        kh = jax.random.split(kh, 4)
        ta = _fold_trunk(_init_trunk_raw(ka, obs_dim, H))
        tc = _fold_trunk(_init_trunk_raw(kc, shared_obs_dim, H))

        wa = 0.01 * jax.random.normal(kh[0], (H, act_dim), jnp.float32)
        ba = jnp.zeros((act_dim,), jnp.float32)
        wc = 0.01 * jax.random.normal(kh[1], (H, comm_dim), jnp.float32)
        bc = jnp.zeros((comm_dim,), jnp.float32)
        logstd = jnp.zeros((comm_dim,), jnp.float32)
        wav = 0.01 * jax.random.normal(kh[2], (H, 1), jnp.float32)
        bav = jnp.zeros((1,), jnp.float32)
        wcv = 0.01 * jax.random.normal(kh[3], (H, 1), jnp.float32)
        bcv = jnp.zeros((1,), jnp.float32)

        self.slab_a, self.slab_b, self.vslab = _pack_fused(
            ta, tc, (wa, ba, wc, bc), (wav, bav, wcv, bcv),
            obs_dim=obs_dim, sobs_dim=shared_obs_dim, off_c=off_c,
            in_fused=in_fused, H=H, A=act_dim, C=comm_dim,
            logit_off=logit_off, mm_dtype=matmul_dtype)

        # log N(mean | mean, std) summed over comm dims -- batch independent.
        self.clogp_const = jnp.sum(-logstd - 0.5 * math.log(2.0 * math.pi))

        dims = (obs_dim, shared_obs_dim, off_c, in_fused, H,
                act_dim, comm_dim, logit_off)
        self._fwd = jax.jit(partial(_forward_impl, dims=dims,
                                    mm_dtype=matmul_dtype))

    def forward(self, obs, shared_obs, act_rnn_states, critic_rnn_states,
                masks, deterministic=True):
        # TODO(synk): deterministic=False (stochastic sampling) not implemented.
        return self._fwd(obs, shared_obs, act_rnn_states, critic_rnn_states,
                         masks, self.slab_a, self.slab_b, self.vslab,
                         self.clogp_const)


# ------------------------------------------------------------------ main

if __name__ == "__main__":
    B = 16                 # n_rollout_threads * n_agents
    OBS_DIM = 32
    SHARED_OBS_DIM = 48
    ACT_DIM = 5
    COMM_DIM = 16
    HIDDEN = 64
    REC_N = 1

    key = jax.random.PRNGKey(0)
    k_param, k_obs, k_sobs, k_ha, k_hc = jax.random.split(key, 5)

    agent = ACC_Agent(k_param, OBS_DIM, SHARED_OBS_DIM, ACT_DIM,
                      comm_dim=COMM_DIM, hidden=HIDDEN)

    obs = jax.random.normal(k_obs, (B, OBS_DIM), jnp.float32)
    shared_obs = jax.random.normal(k_sobs, (B, SHARED_OBS_DIM), jnp.float32)
    act_rnn_states = 0.1 * jax.random.normal(k_ha, (B, REC_N, HIDDEN), jnp.float32)
    critic_rnn_states = 0.1 * jax.random.normal(k_hc, (B, REC_N, HIDDEN), jnp.float32)
    masks = jnp.ones((B, 1), jnp.float32).at[0, 0].set(0.0)   # exercise RNN reset

    outs = agent.forward(obs, shared_obs, act_rnn_states, critic_rnn_states,
                         masks, deterministic=True)
    outs = jax.block_until_ready(outs)

    (act_values, comm_values, actions, action_log_probs,
     comm_actions, comm_action_log_probs, h_act_new, h_cri_new) = outs

    assert act_values.shape == (B, 1)
    assert comm_values.shape == (B, 1)
    assert actions.shape == (B, 1) and actions.dtype == jnp.int32
    assert int(actions.min()) >= 0 and int(actions.max()) < ACT_DIM
    assert action_log_probs.shape == (B, 1)
    assert bool(jnp.all(action_log_probs <= 0.0))
    assert comm_actions.shape == (B, COMM_DIM)
    assert comm_action_log_probs.shape == (B, 1)
    assert h_act_new.shape == (B, REC_N, HIDDEN)
    assert h_cri_new.shape == (B, REC_N, HIDDEN)
    for t in outs:
        assert bool(jnp.all(jnp.isfinite(t.astype(jnp.float32))))

    print("KERNEL_OK")
</pallas_src>

<mosaic_0001>
module attributes {stable_mosaic.version = 11 : i64} {
  func.func @_acc_agent_kernel(%arg0: memref<16x128xf32, #tpu.memory_space<vmem>>, %arg1: memref<16x128xf32, #tpu.memory_space<vmem>>, %arg2: memref<16x1xf32, #tpu.memory_space<vmem>>, %arg3: memref<384x128xbf16, #tpu.memory_space<vmem>>, %arg4: memref<256x384xbf16, #tpu.memory_space<vmem>>, %arg5: memref<8x384xf32, #tpu.memory_space<vmem>>, %arg6: memref<16x128xf32, #tpu.memory_space<vmem>>, %arg7: memref<16x128xf32, #tpu.memory_space<vmem>>) attributes {dimension_semantics = [], scalar_prefetch = 0 : i64, scratch_operands = 0 : i64, tpu.core_type = #tpu.core_type<tc>} {
    %0 = tpu.iota {dimensions = array<i32: 1>} : vector<16x128xi32>
    %c64_i32 = arith.constant 64 : i32
    %1 = vector.broadcast %c64_i32 : i32 to vector<16x128xi32>
    %2 = arith.cmpi slt, %0, %1 : vector<16x128xi32>
    %c0 = arith.constant 0 : index
    %c0_0 = arith.constant 0 : index
    %3 = vector.load %arg3[%c0, %c0_0] : memref<384x128xbf16, #tpu.memory_space<vmem>>, vector<128x128xbf16>
    %c128 = arith.constant 128 : index
    %c0_1 = arith.constant 0 : index
    %4 = vector.load %arg3[%c128, %c0_1] : memref<384x128xbf16, #tpu.memory_space<vmem>>, vector<128x128xbf16>
    %c256 = arith.constant 256 : index
    %c0_2 = arith.constant 0 : index
    %5 = vector.load %arg3[%c256, %c0_2] : memref<384x128xbf16, #tpu.memory_space<vmem>>, vector<128x128xbf16>
    %c0_3 = arith.constant 0 : index
    %c0_4 = arith.constant 0 : index
    %6 = vector.load %arg4[%c0_3, %c0_4] : memref<256x384xbf16, #tpu.memory_space<vmem>>, vector<128x384xbf16>
    %c128_5 = arith.constant 128 : index
    %c0_6 = arith.constant 0 : index
    %7 = vector.load %arg4[%c128_5, %c0_6] : memref<256x384xbf16, #tpu.memory_space<vmem>>, vector<128x384xbf16>
    %c0_7 = arith.constant 0 : index
    %c0_8 = arith.constant 0 : index
    %8 = vector.load %arg5[%c0_7, %c0_8] : memref<8x384xf32, #tpu.memory_space<vmem>>, vector<1x128xf32>
    %c1 = arith.constant 1 : index
    %c0_9 = arith.constant 0 : index
    %9 = vector.load %arg5[%c1, %c0_9] : memref<8x384xf32, #tpu.memory_space<vmem>>, vector<1x128xf32>
    %c2 = arith.constant 2 : index
    %c0_10 = arith.constant 0 : index
    %10 = vector.load %arg5[%c2, %c0_10] : memref<8x384xf32, #tpu.memory_space<vmem>>, vector<1x384xf32>
    %c3 = arith.constant 3 : index
    %c0_11 = arith.constant 0 : index
    %11 = vector.load %arg5[%c3, %c0_11] : memref<8x384xf32, #tpu.memory_space<vmem>>, vector<1x384xf32>
    %c4 = arith.constant 4 : index
    %c0_12 = arith.constant 0 : index
    %12 = vector.load %arg5[%c4, %c0_12] : memref<8x384xf32, #tpu.memory_space<vmem>>, vector<1x128xf32>
    %c0_13 = arith.constant 0 : index
    %c0_14 = arith.constant 0 : index
    %13 = vector.load %arg0[%c0_13, %c0_14] : memref<16x128xf32, #tpu.memory_space<vmem>>, vector<16x128xf32>
    %14 = arith.truncf %13 : vector<16x128xf32> to vector<16x128xbf16>
    %cst = arith.constant dense<0.000000e+00> : vector<16x128xf32>
    %15 = tpu.matmul %14, %3, %cst {dimension_numbers = #tpu.dot_dimension_numbers<[1], [0], [0], [1], [0, 0, 1, 1], [], []>} : vector<16x128xbf16>, vector<128x128xbf16>, vector<16x128xf32> -> vector<16x128xf32>
    %16 = vector.broadcast %8 : vector<1x128xf32> to vector<16x128xf32>
    %17 = arith.addf %15, %16 : vector<16x128xf32>
    %cst_15 = arith.constant 0.000000e+00 : f32
    %18 = vector.broadcast %cst_15 : f32 to vector<16x128xf32>
    %19 = arith.maximumf %17, %18 : vector<16x128xf32>
    %cst_16 = arith.constant 0.000000e+00 : f32
    %20 = vector.broadcast %cst_16 : f32 to vector<16x128xf32>
    %21 = arith.select %2, %19, %20 : vector<16x128xi1>, vector<16x128xf32>
    %22 = arith.subf %19, %21 : vector<16x128xf32>
    %cst_17 = arith.constant dense<0.000000e+00> : vector<16xf32>
    %23 = vector.multi_reduction <add>, %21, %cst_17 [1] : vector<16x128xf32> to vector<16xf32>
    %24 = vector.shape_cast %23 : vector<16xf32> to vector<16x1xf32>
    %cst_18 = arith.constant dense<0.000000e+00> : vector<16xf32>
    %25 = vector.multi_reduction <add>, %22, %cst_18 [1] : vector<16x128xf32> to vector<16xf32>
    %26 = vector.shape_cast %25 : vector<16xf32> to vector<16x1xf32>
    %27 = vector.shape_cast %24 : vector<16x1xf32> to vector<16x1xf32>
    %28 = vector.broadcast %27 : vector<16x1xf32> to vector<16x128xf32>
    %29 = vector.shape_cast %26 : vector<16x1xf32> to vector<16x1xf32>
    %30 = vector.broadcast %29 : vector<16x1xf32> to vector<16x128xf32>
    %31 = arith.select %2, %28, %30 : vector<16x128xi1>, vector<16x128xf32>
    %cst_19 = arith.constant 1.562500e-02 : f32
    %32 = vector.broadcast %cst_19 : f32 to vector<16x128xf32>
    %33 = arith.mulf %31, %32 : vector<16x128xf32>
    %34 = arith.subf %19, %33 : vector<16x128xf32>
    %cst_20 = arith.constant 0.000000e+00 : f32
    %35 = vector.broadcast %cst_20 : f32 to vector<16x128xf32>
    %36 = arith.select %2, %34, %35 : vector<16x128xi1>, vector<16x128xf32>
    %37 = arith.subf %34, %36 : vector<16x128xf32>
    %38 = arith.mulf %36, %36 : vector<16x128xf32>
    %cst_21 = arith.constant dense<0.000000e+00> : vector<16xf32>
    %39 = vector.multi_reduction <add>, %38, %cst_21 [1] : vector<16x128xf32> to vector<16xf32>
    %40 = vector.shape_cast %39 : vector<16xf32> to vector<16x1xf32>
    %41 = arith.mulf %37, %37 : vector<16x128xf32>
    %cst_22 = arith.constant dense<0.000000e+00> : vector<16xf32>
    %42 = vector.multi_reduction <add>, %41, %cst_22 [1] : vector<16x128xf32> to vector<16xf32>
    %43 = vector.shape_cast %42 : vector<16xf32> to vector<16x1xf32>
    %44 = vector.shape_cast %40 : vector<16x1xf32> to vector<16x1xf32>
    %45 = vector.broadcast %44 : vector<16x1xf32> to vector<16x128xf32>
    %46 = vector.shape_cast %43 : vector<16x1xf32> to vector<16x1xf32>
    %47 = vector.broadcast %46 : vector<16x1xf32> to vector<16x128xf32>
    %48 = arith.select %2, %45, %47 : vector<16x128xi1>, vector<16x128xf32>
    %cst_23 = arith.constant 1.562500e-02 : f32
    %49 = vector.broadcast %cst_23 : f32 to vector<16x128xf32>
    %50 = arith.mulf %48, %49 : vector<16x128xf32>
    %cst_24 = arith.constant 9.99999974E-6 : f32
    %51 = vector.broadcast %cst_24 : f32 to vector<16x128xf32>
    %52 = arith.addf %50, %51 : vector<16x128xf32>
    %53 = math.rsqrt %52 : vector<16x128xf32>
    %54 = arith.mulf %34, %53 : vector<16x128xf32>
    %55 = arith.truncf %54 : vector<16x128xf32> to vector<16x128xbf16>
    %cst_25 = arith.constant dense<0.000000e+00> : vector<16x128xf32>
    %56 = tpu.matmul %55, %4, %cst_25 {dimension_numbers = #tpu.dot_dimension_numbers<[1], [0], [0], [1], [0, 0, 1, 1], [], []>} : vector<16x128xbf16>, vector<128x128xbf16>, vector<16x128xf32> -> vector<16x128xf32>
    %57 = vector.broadcast %9 : vector<1x128xf32> to vector<16x128xf32>
    %58 = arith.addf %56, %57 : vector<16x128xf32>
    %cst_26 = arith.constant 0.000000e+00 : f32
    %59 = vector.broadcast %cst_26 : f32 to vector<16x128xf32>
    %60 = arith.maximumf %58, %59 : vector<16x128xf32>
    %cst_27 = arith.constant 0.000000e+00 : f32
    %61 = vector.broadcast %cst_27 : f32 to vector<16x128xf32>
    %62 = arith.select %2, %60, %61 : vector<16x128xi1>, vector<16x128xf32>
    %63 = arith.subf %60, %62 : vector<16x128xf32>
    %cst_28 = arith.constant dense<0.000000e+00> : vector<16xf32>
    %64 = vector.multi_reduction <add>, %62, %cst_28 [1] : vector<16x128xf32> to vector<16xf32>
    %65 = vector.shape_cast %64 : vector<16xf32> to vector<16x1xf32>
    %cst_29 = arith.constant dense<0.000000e+00> : vector<16xf32>
    %66 = vector.multi_reduction <add>, %63, %cst_29 [1] : vector<16x128xf32> to vector<16xf32>
    %67 = vector.shape_cast %66 : vector<16xf32> to vector<16x1xf32>
    %68 = vector.shape_cast %65 : vector<16x1xf32> to vector<16x1xf32>
    %69 = vector.broadcast %68 : vector<16x1xf32> to vector<16x128xf32>
    %70 = vector.shape_cast %67 : vector<16x1xf32> to vector<16x1xf32>
    %71 = vector.broadcast %70 : vector<16x1xf32> to vector<16x128xf32>
    %72 = arith.select %2, %69, %71 : vector<16x128xi1>, vector<16x128xf32>
    %cst_30 = arith.constant 1.562500e-02 : f32
    %73 = vector.broadcast %cst_30 : f32 to vector<16x128xf32>
    %74 = arith.mulf %72, %73 : vector<16x128xf32>
    %75 = arith.subf %60, %74 : vector<16x128xf32>
    %cst_31 = arith.constant 0.000000e+00 : f32
    %76 = vector.broadcast %cst_31 : f32 to vector<16x128xf32>
    %77 = arith.select %2, %75, %76 : vector<16x128xi1>, vector<16x128xf32>
    %78 = arith.subf %75, %77 : vector<16x128xf32>
    %79 = arith.mulf %77, %77 : vector<16x128xf32>
    %cst_32 = arith.constant dense<0.000000e+00> : vector<16xf32>
    %80 = vector.multi_reduction <add>, %79, %cst_32 [1] : vector<16x128xf32> to vector<16xf32>
    %81 = vector.shape_cast %80 : vector<16xf32> to vector<16x1xf32>
    %82 = arith.mulf %78, %78 : vector<16x128xf32>
    %cst_33 = arith.constant dense<0.000000e+00> : vector<16xf32>
    %83 = vector.multi_reduction <add>, %82, %cst_33 [1] : vector<16x128xf32> to vector<16xf32>
    %84 = vector.shape_cast %83 : vector<16xf32> to vector<16x1xf32>
    %85 = vector.shape_cast %81 : vector<16x1xf32> to vector<16x1xf32>
    %86 = vector.broadcast %85 : vector<16x1xf32> to vector<16x128xf32>
    %87 = vector.shape_cast %84 : vector<16x1xf32> to vector<16x1xf32>
    %88 = vector.broadcast %87 : vector<16x1xf32> to vector<16x128xf32>
    %89 = arith.select %2, %86, %88 : vector<16x128xi1>, vector<16x128xf32>
    %cst_34 = arith.constant 1.562500e-02 : f32
    %90 = vector.broadcast %cst_34 : f32 to vector<16x128xf32>
    %91 = arith.mulf %89, %90 : vector<16x128xf32>
    %cst_35 = arith.constant 9.99999974E-6 : f32
    %92 = vector.broadcast %cst_35 : f32 to vector<16x128xf32>
    %93 = arith.addf %91, %92 : vector<16x128xf32>
    %94 = math.rsqrt %93 : vector<16x128xf32>
    %95 = arith.mulf %75, %94 : vector<16x128xf32>
    %c0_36 = arith.constant 0 : index
    %c0_37 = arith.constant 0 : index
    %96 = vector.load %arg1[%c0_36, %c0_37] : memref<16x128xf32, #tpu.memory_space<vmem>>, vector<16x128xf32>
    %c0_38 = arith.constant 0 : index
    %c0_39 = arith.constant 0 : index
    %97 = vector.load %arg2[%c0_38, %c0_39] : memref<16x1xf32, #tpu.memory_space<vmem>>, vector<16x1xf32>
    %98 = vector.broadcast %97 : vector<16x1xf32> to vector<16x128xf32>
    %99 = arith.mulf %96, %98 : vector<16x128xf32>
    %100 = arith.truncf %95 : vector<16x128xf32> to vector<16x128xbf16>
    %cst_40 = arith.constant dense<0.000000e+00> : vector<16x384xf32>
    %101 = tpu.matmul %100, %6, %cst_40 {dimension_numbers = #tpu.dot_dimension_numbers<[1], [0], [0], [1], [0, 0, 1, 1], [], []>} : vector<16x128xbf16>, vector<128x384xbf16>, vector<16x384xf32> -> vector<16x384xf32>
    %102 = vector.broadcast %10 : vector<1x384xf32> to vector<16x384xf32>
    %103 = arith.addf %101, %102 : vector<16x384xf32>
    %104 = arith.truncf %99 : vector<16x128xf32> to vector<16x128xbf16>
    %cst_41 = arith.constant dense<0.000000e+00> : vector<16x384xf32>
    %105 = tpu.matmul %104, %7, %cst_41 {dimension_numbers = #tpu.dot_dimension_numbers<[1], [0], [0], [1], [0, 0, 1, 1], [], []>} : vector<16x128xbf16>, vector<128x384xbf16>, vector<16x384xf32> -> vector<16x384xf32>
    %106 = vector.broadcast %11 : vector<1x384xf32> to vector<16x384xf32>
    %107 = arith.addf %105, %106 : vector<16x384xf32>
    %108 = vector.extract_strided_slice %103 {offsets = [0, 0], sizes = [16, 128], strides = [1, 1]} : vector<16x384xf32> to vector<16x128xf32>
    %109 = vector.extract_strided_slice %107 {offsets = [0, 0], sizes = [16, 128], strides = [1, 1]} : vector<16x384xf32> to vector<16x128xf32>
    %110 = arith.addf %108, %109 : vector<16x128xf32>
    %111 = arith.negf %110 : vector<16x128xf32>
    %112 = math.exp %111 : vector<16x128xf32>
    %cst_42 = arith.constant 1.000000e+00 : f32
    %113 = vector.broadcast %cst_42 : f32 to vector<16x128xf32>
    %114 = arith.addf %113, %112 : vector<16x128xf32>
    %115 = arith.divf %113, %114 : vector<16x128xf32>
    %116 = vector.extract_strided_slice %103 {offsets = [0, 128], sizes = [16, 128], strides = [1, 1]} : vector<16x384xf32> to vector<16x128xf32>
    %117 = vector.extract_strided_slice %107 {offsets = [0, 128], sizes = [16, 128], strides = [1, 1]} : vector<16x384xf32> to vector<16x128xf32>
    %118 = arith.addf %116, %117 : vector<16x128xf32>
    %119 = arith.negf %118 : vector<16x128xf32>
    %120 = math.exp %119 : vector<16x128xf32>
    %cst_43 = arith.constant 1.000000e+00 : f32
    %121 = vector.broadcast %cst_43 : f32 to vector<16x128xf32>
    %122 = arith.addf %121, %120 : vector<16x128xf32>
    %123 = arith.divf %121, %122 : vector<16x128xf32>
    %124 = vector.extract_strided_slice %103 {offsets = [0, 256], sizes = [16, 128], strides = [1, 1]} : vector<16x384xf32> to vector<16x128xf32>
    %125 = vector.extract_strided_slice %107 {offsets = [0, 256], sizes = [16, 128], strides = [1, 1]} : vector<16x384xf32> to vector<16x128xf32>
    %126 = arith.mulf %115, %125 : vector<16x128xf32>
    %127 = arith.addf %124, %126 : vector<16x128xf32>
    %128 = math.tanh %127 : vector<16x128xf32>
    %cst_44 = arith.constant 1.000000e+00 : f32
    %129 = vector.broadcast %cst_44 : f32 to vector<16x128xf32>
    %130 = arith.subf %129, %123 : vector<16x128xf32>
    %131 = arith.mulf %130, %128 : vector<16x128xf32>
    %132 = arith.mulf %123, %99 : vector<16x128xf32>
    %133 = arith.addf %131, %132 : vector<16x128xf32>
    %c0_45 = arith.constant 0 : index
    %c0_46 = arith.constant 0 : index
    %134 = vector.load %arg7[%c0_45, %c0_46] : memref<16x128xf32, #tpu.memory_space<vmem>>, vector<16x128xf32>
    tpu.vector_store %arg7[%c0_45, %c0_46], %133 {strides = array<i32>} : memref<16x128xf32, #tpu.memory_space<vmem>>, vector<16x128xf32>,
    %cst_47 = arith.constant 0.000000e+00 : f32
    %135 = vector.broadcast %cst_47 : f32 to vector<16x128xf32>
    %136 = arith.select %2, %133, %135 : vector<16x128xi1>, vector<16x128xf32>
    %137 = arith.subf %133, %136 : vector<16x128xf32>
    %cst_48 = arith.constant dense<0.000000e+00> : vector<16xf32>
    %138 = vector.multi_reduction <add>, %136, %cst_48 [1] : vector<16x128xf32> to vector<16xf32>
    %139 = vector.shape_cast %138 : vector<16xf32> to vector<16x1xf32>
    %cst_49 = arith.constant dense<0.000000e+00> : vector<16xf32>
    %140 = vector.multi_reduction <add>, %137, %cst_49 [1] : vector<16x128xf32> to vector<16xf32>
    %141 = vector.shape_cast %140 : vector<16xf32> to vector<16x1xf32>
    %142 = vector.shape_cast %139 : vector<16x1xf32> to vector<16x1xf32>
    %143 = vector.broadcast %142 : vector<16x1xf32> to vector<16x128xf32>
    %144 = vector.shape_cast %141 : vector<16x1xf32> to vector<16x1xf32>
    %145 = vector.broadcast %144 : vector<16x1xf32> to vector<16x128xf32>
    %146 = arith.select %2, %143, %145 : vector<16x128xi1>, vector<16x128xf32>
    %cst_50 = arith.constant 1.562500e-02 : f32
    %147 = vector.broadcast %cst_50 : f32 to vector<16x128xf32>
    %148 = arith.mulf %146, %147 : vector<16x128xf32>
    %149 = arith.subf %133, %148 : vector<16x128xf32>
    %cst_51 = arith.constant 0.000000e+00 : f32
    %150 = vector.broadcast %cst_51 : f32 to vector<16x128xf32>
    %151 = arith.select %2, %149, %150 : vector<16x128xi1>, vector<16x128xf32>
    %152 = arith.subf %149, %151 : vector<16x128xf32>
    %153 = arith.mulf %151, %151 : vector<16x128xf32>
    %cst_52 = arith.constant dense<0.000000e+00> : vector<16xf32>
    %154 = vector.multi_reduction <add>, %153, %cst_52 [1] : vector<16x128xf32> to vector<16xf32>
    %155 = vector.shape_cast %154 : vector<16xf32> to vector<16x1xf32>
    %156 = arith.mulf %152, %152 : vector<16x128xf32>
    %cst_53 = arith.constant dense<0.000000e+00> : vector<16xf32>
    %157 = vector.multi_reduction <add>, %156, %cst_53 [1] : vector<16x128xf32> to vector<16xf32>
    %158 = vector.shape_cast %157 : vector<16xf32> to vector<16x1xf32>
    %159 = vector.shape_cast %155 : vector<16x1xf32> to vector<16x1xf32>
    %160 = vector.broadcast %159 : vector<16x1xf32> to vector<16x128xf32>
    %161 = vector.shape_cast %158 : vector<16x1xf32> to vector<16x1xf32>
    %162 = vector.broadcast %161 : vector<16x1xf32> to vector<16x128xf32>
    %163 = arith.select %2, %160, %162 : vector<16x128xi1>, vector<16x128xf32>
    %cst_54 = arith.constant 1.562500e-02 : f32
    %164 = vector.broadcast %cst_54 : f32 to vector<16x128xf32>
    %165 = arith.mulf %163, %164 : vector<16x128xf32>
    %cst_55 = arith.constant 9.99999974E-6 : f32
    %166 = vector.broadcast %cst_55 : f32 to vector<16x128xf32>
    %167 = arith.addf %165, %166 : vector<16x128xf32>
    %168 = math.rsqrt %167 : vector<16x128xf32>
    %169 = arith.mulf %149, %168 : vector<16x128xf32>
    %170 = arith.truncf %169 : vector<16x128xf32> to vector<16x128xbf16>
    %cst_56 = arith.constant dense<0.000000e+00> : vector<16x128xf32>
    %171 = tpu.matmul %170, %5, %cst_56 {dimension_numbers = #tpu.dot_dimension_numbers<[1], [0], [0], [1], [0, 0, 1, 1], [], []>} : vector<16x128xbf16>, vector<128x128xbf16>, vector<16x128xf32> -> vector<16x128xf32>
    %172 = vector.broadcast %12 : vector<1x128xf32> to vector<16x128xf32>
    %173 = arith.addf %171, %172 : vector<16x128xf32>
    %c24_i32 = arith.constant 24 : i32
    %174 = vector.broadcast %c24_i32 : i32 to vector<16x128xi32>
    %175 = arith.cmpi sge, %0, %174 : vector<16x128xi32>
    %c29_i32 = arith.constant 29 : i32
    %176 = vector.broadcast %c29_i32 : i32 to vector<16x128xi32>
    %177 = arith.cmpi slt, %0, %176 : vector<16x128xi32>
    %178 = arith.andi %175, %177 : vector<16x128xi1>
    %cst_57 = arith.constant 0xFF800000 : f32
    %179 = vector.broadcast %cst_57 : f32 to vector<16x128xf32>
    %180 = arith.select %178, %173, %179 : vector<16x128xi1>, vector<16x128xf32>
    %cst_58 = arith.constant dense<0xFF800000> : vector<16xf32>
    %181 = vector.multi_reduction <maximumf>, %180, %cst_58 [1] : vector<16x128xf32> to vector<16xf32>
    %182 = vector.shape_cast %181 : vector<16xf32> to vector<16x1xf32>
    %183 = vector.broadcast %182 : vector<16x1xf32> to vector<16x128xf32>
    %184 = arith.subf %173, %183 : vector<16x128xf32>
    %cst_59 = arith.constant 0xFF800000 : f32
    %185 = vector.broadcast %cst_59 : f32 to vector<16x128xf32>
    %186 = arith.select %178, %184, %185 : vector<16x128xi1>, vector<16x128xf32>
    %187 = math.exp %186 : vector<16x128xf32>
    %cst_60 = arith.constant dense<0.000000e+00> : vector<16xf32>
    %188 = vector.multi_reduction <add>, %187, %cst_60 [1] : vector<16x128xf32> to vector<16xf32>
    %189 = vector.shape_cast %188 : vector<16xf32> to vector<16x1xf32>
    %190 = vector.broadcast %182 : vector<16x1xf32> to vector<16x128xf32>
    %191 = arith.cmpf oge, %180, %190 : vector<16x128xf32>
    %c24_i32_61 = arith.constant 24 : i32
    %192 = vector.broadcast %c24_i32_61 : i32 to vector<16x128xi32>
    %193 = arith.subi %0, %192 : vector<16x128xi32>
    %c5_i32 = arith.constant 5 : i32
    %194 = vector.broadcast %c5_i32 : i32 to vector<16x128xi32>
    %195 = arith.select %191, %193, %194 : vector<16x128xi1>, vector<16x128xi32>
    %cst_62 = arith.constant dense<2147483647> : vector<16xi32>
    %196 = vector.multi_reduction <minsi>, %195, %cst_62 [1] : vector<16x128xi32> to vector<16xi32>
    %197 = vector.shape_cast %196 : vector<16xi32> to vector<16x1xi32>
    %198 = arith.sitofp %197 : vector<16x1xi32> to vector<16x1xf32>
    %199 = math.log %189 : vector<16x1xf32>
    %cst_63 = arith.constant 0.000000e+00 : f32
    %200 = vector.broadcast %cst_63 : f32 to vector<16x1xf32>
    %201 = arith.subf %200, %199 : vector<16x1xf32>
    %c0_i32 = arith.constant 0 : i32
    %202 = vector.broadcast %c0_i32 : i32 to vector<16x128xi32>
    %203 = arith.cmpi eq, %0, %202 : vector<16x128xi32>
    %c1_i32 = arith.constant 1 : i32
    %204 = vector.broadcast %c1_i32 : i32 to vector<16x128xi32>
    %205 = arith.cmpi eq, %0, %204 : vector<16x128xi32>
    %c24_i32_64 = arith.constant 24 : i32
    %206 = vector.broadcast %c24_i32_64 : i32 to vector<16x128xi32>
    %207 = arith.cmpi slt, %0, %206 : vector<16x128xi32>
    %cst_65 = arith.constant 0.000000e+00 : f32
    %208 = vector.broadcast %cst_65 : f32 to vector<16x128xf32>
    %209 = arith.select %207, %173, %208 : vector<16x128xi1>, vector<16x128xf32>
    %210 = vector.shape_cast %201 : vector<16x1xf32> to vector<16x1xf32>
    %211 = vector.broadcast %210 : vector<16x1xf32> to vector<16x128xf32>
    %212 = arith.select %205, %211, %209 : vector<16x128xi1>, vector<16x128xf32>
    %213 = vector.shape_cast %198 : vector<16x1xf32> to vector<16x1xf32>
    %214 = vector.broadcast %213 : vector<16x1xf32> to vector<16x128xf32>
    %215 = arith.select %203, %214, %212 : vector<16x128xi1>, vector<16x128xf32>
    %c0_66 = arith.constant 0 : index
    %c0_67 = arith.constant 0 : index
    %216 = vector.load %arg6[%c0_66, %c0_67] : memref<16x128xf32, #tpu.memory_space<vmem>>, vector<16x128xf32>
    tpu.vector_store %arg6[%c0_66, %c0_67], %215 {strides = array<i32>} : memref<16x128xf32, #tpu.memory_space<vmem>>, vector<16x128xf32>,
    return
  }
}

</mosaic_0001>

<bundles_post_ra>
// kernel: _forward_impl.1
= control target key start
LH: loop header
LB: loop body
LE: loop exit
PB: predicated region body
PF: predicated region fallthrough
CT: control target
= control target key end

     0   :  { %13 = vsyncpa [#allocation3], 0  ;;  %s1802_s0 = inlined_call_operand.vmem [shape: f32[16,128], index: 0, kind: input, shape index: {}]   ;;  %s1803_s1 = inlined_call_operand.vmem [shape: f32[16,128], index: 1, kind: input, shape index: {}]   ;;  %s1804_s2 = inlined_call_operand.vmem [shape: f32[16,1], index: 2, kind: input, shape index: {}]   ;;  %s1805_s3 = inlined_call_operand.hbm [shape: bf16[384,128], index: 3, kind: input, shape index: {}]   ;;  %s1806_s4 = inlined_call_operand.hbm [shape: bf16[256,384], index: 4, kind: input, shape index: {}]   ;;  %s1807_s5 = inlined_call_operand.vmem [shape: f32[8,384], index: 5, kind: input, shape index: {}]   ;;  %s1808_s6 = inlined_call_operand.vmem [shape: f32[16,128], index: 6, kind: output, shape index: {0}]   ;;  %s1809_s7 = inlined_call_operand.vmem [shape: f32[16,128], index: 7, kind: output, shape index: {1}]  }
   0x1   :  { %s25_s26 = sshll.u32 %s1805_s3, 4  ;;  %s26_s26 = int_to_ptr.hbm [resolvable:$true] %s25_s26 }
   0x2   :  { %14 = vsyncpa [#allocation5], 0  ;;  %s1580_s27 = smov [#allocation2]   ;;  %s38_s8 = sshll.u32 %s1806_s4, 4  ;;  %s39_s8 = int_to_ptr.hbm [resolvable:$true] %s38_s8 }
   0x3   :  { %s27_s28 = sshll.u32 %s1580_s27, 4  ;;  %s1581_s9 = smov 64   ;;  %s28_s28 = int_to_ptr.vmem [resolvable:$true] %s27_s28 }
   0x4   :  { %s1582_s10 = smov 4   ;;  %s1583_s11 = smov [#allocation4]  }
   0x5   :  { %33 = dma.hbm_to_vmem [thread:$0]  %s26_s26, 3072, %s28_s28, [#allocation3], %s1581_s9, %s1581_s9, %s1582_s10  }
   0x6   :  { %s40_s12 = sshll.u32 %s1583_s11, 4  ;;  %s1584_s13 = smov 192   ;;  %s41_s12 = int_to_ptr.vmem [resolvable:$true] %s40_s12 }
   0x7   :  { %s1585_s14 = smov 12  }
   0x8   :  { %46 = dma.hbm_to_vmem [thread:$0]  %s39_s8, 6144, %s41_s12, [#allocation5], %s1584_s13, %s1584_s13, %s1585_s14  }
   0x9   :  { %1576 = dma.done.wait [#allocation3], 3072  }
   0xa   :  { %1577 = vsyncadd [#allocation3], 4294964224 }
   0xb   :  { %1578 = dma.done.wait [#allocation5], 6144  }
   0xc   :  { %1579 = vsyncadd [#allocation5], 4294961152  ;;  %v1413_v0 = vld [vmem:[#allocation2 + $0x38] sm:$0xff]  ;;  %v1412_v1 = vld [vmem:[#allocation2 + $0x30] sm:$0xff]  ;;  %v57_v11 = vlaneseq }
   0xd   :  { %230 = vmatpush.bf16.msra.mxu0 %v1413_v0  ;;  %v1411_v2 = vld [vmem:[#allocation2 + $0x28] sm:$0xff]  ;;  %v1410_v3 = vld [vmem:[#allocation2 + $0x20] sm:$0xff]  ;;  %v1409_v4 = vld [vmem:[#allocation2 + $0x18] sm:$0xff] }
   0xe   :  { %v1408_v5 = vld [vmem:[#allocation2 + $0x10] sm:$0xff]  ;;  %v1407_v6 = vld [vmem:[#allocation2 + $0x8] sm:$0xff]  ;;  %v1406_v7 = vld [vmem:[#allocation2] sm:$0xff]  ;;  %v1642_v13 = vand.u32 127, %v57_v11 }
   0xf   :  { %v179_v8 = vld [vmem:[%s1802_s0] sm:$0xff]  ;;  %v180_v9 = vld [vmem:[%s1802_s0 + $0x8] sm:$0xff]  ;;  %v1421_v42 = vld [vmem:[#allocation2 + $0x78] sm:$0xff] }
  0x10   :  { %v181_v10 = vpack.c.bf16 %v180_v9, %v179_v8  ;;  %v172_v12 = vld [vmem:[%s1807_s5] ss:$0 sm:$0xff]  ;;  %vm59_vm0 = vcmp.lt.s32.totalorder %v1642_v13, 64  ;;  %357 = vmatpush.bf16.msra.mxu1 %v1421_v42  ;;  %v1420_v43 = vld [vmem:[#allocation2 + $0x70] sm:$0xff]  ;;  %v1419_v44 = vld [vmem:[#allocation2 + $0x68] sm:$0xff] }
  0x11   :  { %231 = vmatpush.bf16.msra.mxu0 %v1412_v1  ;;  %v1418_v45 = vld [vmem:[#allocation2 + $0x60] sm:$0xff]  ;;  %v1417_v46 = vld [vmem:[#allocation2 + $0x58] sm:$0xff]  ;;  %v1416_v47 = vld [vmem:[#allocation2 + $0x50] sm:$0xff] }
  0x12   :  { %v1415_v48 = vld [vmem:[#allocation2 + $0x48] sm:$0xff]  ;;  %v1414_v49 = vld [vmem:[#allocation2 + $0x40] sm:$0xff] }
  0x13   :  { %v1451_v42 = vld [vmem:[#allocation4 + $0xac] sm:$0xf] }
  0x14   :  { %358 = vmatpush.bf16.msra.mxu1 %v1420_v43  ;;  %v1265_v43 = vld [vmem:[#allocation4 + $0xb4] sm:$0xf0] }
  0x15   :  { %232 = vmatpush.bf16.msra.mxu0 %v1411_v2 }
  0x18   :  { %359 = vmatpush.bf16.msra.mxu1 %v1419_v44  ;;  %v1251_v44 = vld [vmem:[#allocation4 + $0x90] sm:$0xf] }
  0x19   :  { %233 = vmatpush.bf16.msra.mxu0 %v1410_v3 }
  0x1c   :  { %360 = vmatpush.bf16.msra.mxu1 %v1418_v45 }
  0x1d   :  { %234 = vmatpush.bf16.msra.mxu0 %v1409_v4 }
  0x20   :  { %361 = vmatpush.bf16.msra.mxu1 %v1417_v46  ;;  %v1268_v46 = vor.u32 %v1451_v42, %v1265_v43 }
  0x21   :  { %235 = vmatpush.bf16.msra.mxu0 %v1408_v5 }
  0x22   :  { %601 = vmatpush.bf16.msra.mxu3 %v1268_v46  ;;  %v1470_v46 = vld [vmem:[#allocation4 + $0x140] sm:$0xf0] }
  0x24   :  { %362 = vmatpush.bf16.msra.mxu1 %v1416_v47  ;;  %v1449_v47 = vld [vmem:[#allocation4 + $0x98] sm:$0xf0] }
  0x25   :  { %236 = vmatpush.bf16.msra.mxu0 %v1407_v6 }
  0x28   :  { %363 = vmatpush.bf16.msra.mxu1 %v1415_v48  ;;  %v1448_v48 = vld [vmem:[#allocation4 + $0x94] sm:$0xf] }
  0x29   :  { %237 = vmatpush.bf16.msra.mxu0 %v1406_v7 }
  0x2c   :  { %238 = vmatmul.bf16.vlgmr.msra.gmra.mxu0 %v181_v10  ;;  %364 = vmatpush.bf16.msra.mxu1 %v1414_v49  ;;  %v1253_v49 = vld [vmem:[#allocation4 + $0x9c] sm:$0xf0] }
  0xa9   :  { %v239_v14 = vpop.f32.mrf.mxu0 }
  0xaa   :  { %v240_v15 = vadd.f32 %v239_v14, %v172_v12  ;;  %v173_v14 = vld [vmem:[%s1807_s5 + $0x1] ss:$0 sm:$0xff] }
  0xac   :  { %v244_v16 = vmax.f32 %v240_v15, 0.0 }
  0xae   :  { %v246_v17 = vsel %vm59_vm0, %v244_v16, 0.0 }
  0xaf   :  { %250 = vadd.xlane.f32.xlu0 %v246_v17  ;;  %v248_v18 = vsub.f32 %v244_v16, %v246_v17 }
  0xb1   :  { %v241_v19 = vpop.f32.mrf.mxu0  ;;  %254 = vadd.xlane.f32.xlu1 %v248_v18 }
  0xb2   :  { %v242_v20 = vadd.f32 %v241_v19, %v172_v12 }
  0xb4   :  { %v245_v21 = vmax.f32 %v242_v20, 0.0 }
  0xb6   :  { %v247_v22 = vsel %vm59_vm0, %v245_v21, 0.0 }
  0xb7   :  { %252 = vadd.xlane.f32.xlu0 %v247_v22  ;;  %v249_v23 = vsub.f32 %v245_v21, %v247_v22 }
  0xb9   :  { %256 = vadd.xlane.f32.xlu1 %v249_v23 }
 0x122   :  { %v251_v24 = vpop.xlane.xlu0 %250 }
 0x124   :  { %v255_v25 = vpop.xlane.xlu1 %254 }
 0x125   :  { %v258_v26 = vsel %vm59_vm0, %v251_v24, %v255_v25  ;;  %v1586_v25 = vmov 0  }
 0x126   :  { %v260_v27 = vmul.f32 0.015625, %v258_v26  ;;  %1485 = vset.pattern.permute.xlu1 %v1586_v25  ;;  %1486 = vset.pattern.permute.xlu2 %v1586_v25 }
 0x127   :  { %1487 = vset.pattern.permute.xlu0 %v1586_v25 }
 0x128   :  { %v1651_v28 = vsub.f32 %v244_v16, %v260_v27 }
 0x12a   :  { %v264_v29 = vsel %vm59_vm0, %v1651_v28, 0.0  ;;  %v253_v32 = vpop.xlane.xlu0 %252 }
 0x12b   :  { %v268_v30 = vmul.f32 %v264_v29, %v264_v29  ;;  %v266_v31 = vsub.f32 %v1651_v28, %v264_v29 }
 0x12c   :  { %v257_v33 = vpop.xlane.xlu1 %256 }
 0x12d   :  { %v259_v34 = vsel %vm59_vm0, %v253_v32, %v257_v33  ;;  %270 = vadd.xlane.f32.xlu2 %v268_v30  ;;  %v274_v35 = vmul.f32 %v266_v31, %v266_v31 }
 0x12e   :  { %v261_v36 = vmul.f32 0.015625, %v259_v34 }
 0x12f   :  { %276 = vadd.xlane.f32.xlu0 %v274_v35 }
 0x130   :  { %v263_v37 = vsub.f32 %v245_v21, %v261_v36 }
 0x132   :  { %v265_v38 = vsel %vm59_vm0, %v263_v37, 0.0 }
 0x133   :  { %v269_v39 = vmul.f32 %v265_v38, %v265_v38  ;;  %v267_v40 = vsub.f32 %v263_v37, %v265_v38 }
 0x135   :  { %272 = vadd.xlane.f32.xlu2 %v269_v39  ;;  %v275_v41 = vmul.f32 %v267_v40, %v267_v40  ;;  %v1263_v39 = vld [vmem:[#allocation4 + $0xa8] sm:$0xf]  ;;  %v1452_v40 = vld [vmem:[#allocation4 + $0xb0] sm:$0xf0] }
 0x137   :  { %278 = vadd.xlane.f32.xlu1 %v275_v41  ;;  %v1264_v41 = vor.u32 %v1452_v40, %v1263_v39  ;;  %v1193_v39 = vld [vmem:[#allocation4 + $0x24] sm:$0xf0] }
 0x138   :  { %v1235_v40 = vld [vmem:[#allocation4 + $0x68] sm:$0xf] }
 0x139   :  { %587 = vmatpush.bf16.msra.mxu2 %v1264_v41  ;;  %v1444_v41 = vld [vmem:[#allocation4 + $0x70] sm:$0xf0] }
 0x13a   :  { %v1236_v43 = vor.u32 %v1444_v41, %v1235_v40 }
 0x1a0   :  { %v271_v50 = vpop.xlane.xlu2 %270 }
 0x1a2   :  { %v277_v51 = vpop.xlane.xlu0 %276 }
 0x1a3   :  { %v280_v52 = vsel %vm59_vm0, %v271_v50, %v277_v51  ;;  %v1252_v50 = vor.u32 %v1449_v47, %v1251_v44  ;;  %v1335_v44 = vld [vmem:[#allocation4 + $0x138] sm:$0xf] }
 0x1a4   :  { %v282_v53 = vmul.f32 0.015625, %v280_v52  ;;  %v1256_v52 = vor.u32 %v1448_v48, %v1253_v49  ;;  %v1336_v47 = vor.u32 %v1470_v46, %v1335_v44  ;;  %v1179_v48 = vld [vmem:[#allocation4] sm:$0xf]  ;;  %v1431_v49 = vld [vmem:[#allocation4 + $0x8] sm:$0xf0] }
 0x1a5   :  { %588 = vmatpush.bf16.msra.mxu2 %v1252_v50  ;;  %v1430_v50 = vld [vmem:[#allocation4 + $0x4] sm:$0xf]  ;;  %v1463_v44 = vld [vmem:[#allocation4 + $0x10c] sm:$0xf]  ;;  %v1313_v46 = vld [vmem:[#allocation4 + $0x114] sm:$0xf0] }
 0x1a6   :  { %v284_v54 = vadd.f32 1e-05, %v282_v53  ;;  %602 = vmatpush.bf16.msra.mxu3 %v1256_v52  ;;  %v1181_v52 = vld [vmem:[#allocation4 + $0xc] sm:$0xf0] }
 0x1a8   :  { %1488 = vrsqrt.f32 %v284_v54  ;;  %v273_v55 = vpop.xlane.xlu2 %272  ;;  %vm292_vm2 = vweird.f32 %v284_v54 }
 0x1aa   :  { %v279_v56 = vpop.xlane.xlu1 %278 }
 0x1ab   :  { %v281_v57 = vsel %vm59_vm0, %v273_v55, %v279_v56  ;;  %v438_v56 = vld [vmem:[%s1804_s2 + $0x8] sm:$0xff] }
 0x1ac   :  { %v283_v58 = vmul.f32 0.015625, %v281_v57  ;;  %v437_v57 = vld [vmem:[%s1804_s2] sm:$0xff] }
 0x1ae   :  { %v1489_v59 = vpop.eup %1488  ;;  %v285_v60 = vadd.f32 1e-05, %v283_v58  ;;  %v1239_v58 = vld [vmem:[#allocation4 + $0x78] sm:$0xf] }
 0x1af   :  { %v287_v61 = vmul.f32 %v1489_v59, %v284_v54  ;;  %vm293_vm1 = vweird.f32 %v1489_v59 }
 0x1b0   :  { %1490 = vrsqrt.f32 %v285_v60  ;;  %vm294_vm4 = vmor %vm292_vm2, %vm293_vm1  ;;  %vm302_vm5 = vweird.f32 %v285_v60 }
 0x1b1   :  { %v288_v62 = vmul.f32 %v1489_v59, %v287_v61 }
 0x1b3   :  { %v289_v63 = vmul.f32 0.5, %v288_v62  ;;  %v1241_v62 = vld [vmem:[#allocation4 + $0x84] sm:$0xf0] }
 0x1b5   :  { %v290_v1 = vsub.f32 1.5, %v289_v63 }
 0x1b6   :  { %v1491_v0 = vpop.eup %1490 }
 0x1b7   :  { %v297_v2 = vmul.f32 %v1491_v0, %v285_v60  ;;  %v291_v5 = vmul.f32 %v1489_v59, %v290_v1  ;;  %vm303_vm3 = vweird.f32 %v1491_v0  ;;  %v1445_v60 = vld [vmem:[#allocation4 + $0x7c] sm:$0xf]  ;;  %v1443_v1 = vld [vmem:[#allocation4 + $0x68] sm:$0xf0] }
 0x1b8   :  { %vm304_vm6 = vmor %vm302_vm5, %vm303_vm3  ;;  %v1244_v63 = vor.u32 %v1445_v60, %v1241_v62  ;;  %v1323_v62 = vld [vmem:[#allocation4 + $0x120] sm:$0xf] }
 0x1b9   :  { %v298_v3 = vmul.f32 %v1491_v0, %v297_v2  ;;  %v295_v7 = vsel %vm294_vm4, %v1489_v59, %v291_v5  ;;  %v1446_v59 = vld [vmem:[#allocation4 + $0x80] sm:$0xf0]  ;;  %v1271_v5 = vld [vmem:[#allocation4 + $0xb0] sm:$0xf] }
 0x1ba   :  { %v306_v10 = vmul.f32 %v295_v7, %v1651_v28  ;;  %v1240_v61 = vor.u32 %v1446_v59, %v1239_v58  ;;  %603 = vmatpush.bf16.msra.mxu3 %v1244_v63  ;;  %v1442_v2 = vld [vmem:[#allocation4 + $0x64] sm:$0xf]  ;;  %v1361_v58 = vld [vmem:[#allocation4 + $0x174] sm:$0xf0]  ;;  %v1367_v59 = vld [vmem:[#allocation4 + $0x170] sm:$0xf] }
 0x1bb   :  { %v299_v4 = vmul.f32 0.5, %v298_v3  ;;  %v1467_v63 = vld [vmem:[#allocation4 + $0x128] sm:$0xf0] }
 0x1bc   :  { %589 = vmatpush.bf16.msra.mxu2 %v1240_v61  ;;  %v1477_v61 = vld [vmem:[#allocation4 + $0x178] sm:$0xf0] }
 0x1bd   :  { %v300_v6 = vsub.f32 1.5, %v299_v4  ;;  %v1229_v4 = vld [vmem:[#allocation4 + $0x6c] sm:$0xf0] }
 0x1be   :  { %v1232_v7 = vor.u32 %v1442_v2, %v1229_v4  ;;  %v1211_v2 = vld [vmem:[#allocation4 + $0x38] sm:$0xf]  ;;  %v1472_v4 = vld [vmem:[#allocation4 + $0x154] sm:$0xf] }
 0x1bf   :  { %v301_v8 = vmul.f32 %v1491_v0, %v300_v6  ;;  %v1453_v6 = vld [vmem:[#allocation4 + $0xb8] sm:$0xf0] }
 0x1c0   :  { %604 = vmatpush.bf16.msra.mxu3 %v1232_v7  ;;  %v1355_v7 = vld [vmem:[#allocation4 + $0x158] sm:$0xf] }
 0x1c1   :  { %v305_v9 = vsel %vm304_vm6, %v1491_v0, %v301_v8  ;;  %v1227_v0 = vld [vmem:[#allocation4 + $0x60] sm:$0xf]  ;;  %v1272_v8 = vor.u32 %v1453_v6, %v1271_v5 }
 0x1c2   :  { %v307_v11 = vmul.f32 %v305_v9, %v263_v37  ;;  %v1228_v3 = vor.u32 %v1443_v1, %v1227_v0  ;;  %v1215_v9 = vld [vmem:[#allocation4 + $0x48] sm:$0xf]  ;;  %v1368_v0 = vor.u32 %v1477_v61, %v1367_v59  ;;  %v1324_v1 = vor.u32 %v1467_v63, %v1323_v62  ;;  %v1349_v6 = vld [vmem:[#allocation4 + $0x15c] sm:$0xf0]  ;;  %v1457_v61 = vld [vmem:[#allocation4 + $0xdc] sm:$0xf] }
 0x1c3   :  { %615 = vmatpush.bf16.msrb.mxu0 %v1272_v8  ;;  %v1474_v8 = vld [vmem:[#allocation4 + $0x160] sm:$0xf0]  ;;  %v1289_v62 = vld [vmem:[#allocation4 + $0xe4] sm:$0xf0] }
 0x1c4   :  { %v308_v12 = vpack.c.bf16 %v307_v11, %v306_v10  ;;  %590 = vmatpush.bf16.msra.mxu2 %v1228_v3  ;;  %v1440_v10 = vld [vmem:[#allocation4 + $0x50] sm:$0xf0]  ;;  %v1439_v11 = vld [vmem:[#allocation4 + $0x4c] sm:$0xf]  ;;  %v1438_v3 = vld [vmem:[#allocation4 + $0x40] sm:$0xf0] }
 0x1c5   :  { %v1212_v5 = vor.u32 %v1438_v3, %v1211_v2  ;;  %v1459_v2 = vld [vmem:[#allocation4 + $0xe8] sm:$0xf0] }
 0x1c6   :  { %365 = vmatmul.bf16.vlgmr.msra.gmra.mxu1 %v308_v12  ;;  %v1216_v12 = vor.u32 %v1440_v10, %v1215_v9  ;;  %v1352_v9 = vor.u32 %v1472_v4, %v1349_v6  ;;  %v1356_v10 = vor.u32 %v1474_v8, %v1355_v7  ;;  %v1454_v7 = vld [vmem:[#allocation4 + $0xc4] sm:$0xf]  ;;  %v1277_v8 = vld [vmem:[#allocation4 + $0xcc] sm:$0xf0] }
 0x1c8   :  { %591 = vmatpush.bf16.msra.mxu2 %v1216_v12  ;;  %v1464_v12 = vld [vmem:[#allocation4 + $0x110] sm:$0xf0] }
 0x243   :  { %v366_v15 = vpop.f32.mrf.mxu1 }
 0x244   :  { %v367_v16 = vadd.f32 %v366_v15, %v173_v14  ;;  %v1259_v15 = vld [vmem:[#allocation4 + $0x98] sm:$0xf] }
 0x246   :  { %v371_v17 = vmax.f32 %v367_v16, 0.0  ;;  %v1450_v16 = vld [vmem:[#allocation4 + $0xa0] sm:$0xf0] }
 0x248   :  { %v373_v18 = vsel %vm59_vm0, %v371_v17, 0.0 }
 0x249   :  { %377 = vadd.xlane.f32.xlu2 %v373_v18  ;;  %v375_v19 = vsub.f32 %v371_v17, %v373_v18  ;;  %v1260_v18 = vor.u32 %v1450_v16, %v1259_v15  ;;  %v1199_v15 = vld [vmem:[#allocation4 + $0x20] sm:$0xf]  ;;  %v1435_v16 = vld [vmem:[#allocation4 + $0x28] sm:$0xf0] }
 0x24b   :  { %v368_v20 = vpop.f32.mrf.mxu1  ;;  %381 = vadd.xlane.f32.xlu1 %v375_v19  ;;  %v1359_v19 = vld [vmem:[#allocation4 + $0x168] sm:$0xf]  ;;  %616 = vmatpush.bf16.msrb.mxu0 %v1260_v18  ;;  %v1200_v18 = vor.u32 %v1435_v16, %v1199_v15  ;;  %v1280_v15 = vor.u32 %v1454_v7, %v1277_v8 }
 0x24c   :  { %v369_v21 = vadd.f32 %v368_v20, %v173_v14  ;;  %v1217_v14 = vld [vmem:[#allocation4 + $0x54] sm:$0xf0]  ;;  %v1476_v20 = vld [vmem:[#allocation4 + $0x170] sm:$0xf0] }
 0x24e   :  { %v372_v22 = vmax.f32 %v369_v21, 0.0  ;;  %v1360_v21 = vor.u32 %v1476_v20, %v1359_v19  ;;  %v1337_v19 = vld [vmem:[#allocation4 + $0x144] sm:$0xf0]  ;;  %v1343_v20 = vld [vmem:[#allocation4 + $0x140] sm:$0xf] }
 0x250   :  { %v374_v23 = vsel %vm59_vm0, %v372_v22, 0.0  ;;  %765 = vmatpush.bf16.msrb.mxu1 %v1360_v21  ;;  %v1471_v21 = vld [vmem:[#allocation4 + $0x148] sm:$0xf0] }
 0x251   :  { %379 = vadd.xlane.f32.xlu0 %v374_v23  ;;  %v376_v24 = vsub.f32 %v372_v22, %v374_v23  ;;  %v1437_v23 = vld [vmem:[#allocation4 + $0x38] sm:$0xf0] }
 0x253   :  { %383 = vadd.xlane.f32.xlu2 %v376_v24  ;;  %v1436_v24 = vld [vmem:[#allocation4 + $0x34] sm:$0xf] }
 0x2bc   :  { %v378_v26 = vpop.xlane.xlu2 %377 }
 0x2be   :  { %v382_v27 = vpop.xlane.xlu1 %381 }
 0x2bf   :  { %v385_v28 = vsel %vm59_vm0, %v378_v26, %v382_v27  ;;  %v1205_v26 = vld [vmem:[#allocation4 + $0x3c] sm:$0xf0] }
 0x2c0   :  { %v387_v29 = vmul.f32 0.015625, %v385_v28  ;;  %v1247_v27 = vld [vmem:[#allocation4 + $0x80] sm:$0xf]  ;;  %v1447_v28 = vld [vmem:[#allocation4 + $0x88] sm:$0xf0] }
 0x2c2   :  { %v1675_v30 = vsub.f32 %v371_v17, %v387_v29  ;;  %v1220_v17 = vor.u32 %v1439_v11, %v1217_v14  ;;  %v1208_v29 = vor.u32 %v1436_v24, %v1205_v26  ;;  %v1311_v11 = vld [vmem:[#allocation4 + $0x108] sm:$0xf]  ;;  %v1299_v24 = vld [vmem:[#allocation4 + $0xf0] sm:$0xf] }
 0x2c3   :  { %v1312_v14 = vor.u32 %v1464_v12, %v1311_v11  ;;  %v1187_v26 = vld [vmem:[#allocation4 + $0x8] sm:$0xf]  ;;  %v1456_v12 = vld [vmem:[#allocation4 + $0xd0] sm:$0xf0] }
 0x2c4   :  { %v391_v31 = vsel %vm59_vm0, %v1675_v30, 0.0  ;;  %v380_v34 = vpop.xlane.xlu0 %379  ;;  %605 = vmatpush.bf16.msra.mxu3 %v1220_v17  ;;  %v1469_v17 = vld [vmem:[#allocation4 + $0x13c] sm:$0xf]  ;;  %v1283_v11 = vld [vmem:[#allocation4 + $0xc8] sm:$0xf] }
 0x2c5   :  { %v395_v32 = vmul.f32 %v391_v31, %v391_v31  ;;  %v393_v33 = vsub.f32 %v1675_v30, %v391_v31  ;;  %v1248_v31 = vor.u32 %v1447_v28, %v1247_v27  ;;  %v1432_v28 = vld [vmem:[#allocation4 + $0x10] sm:$0xf0] }
 0x2c6   :  { %v384_v35 = vpop.xlane.xlu2 %383 }
 0x2c7   :  { %v386_v36 = vsel %vm59_vm0, %v380_v34, %v384_v35  ;;  %397 = vadd.xlane.f32.xlu0 %v395_v32  ;;  %v401_v37 = vmul.f32 %v393_v33, %v393_v33  ;;  %v1347_v32 = vld [vmem:[#allocation4 + $0x150] sm:$0xf]  ;;  %v1473_v33 = vld [vmem:[#allocation4 + $0x158] sm:$0xf0]  ;;  %617 = vmatpush.bf16.msrb.mxu0 %v1248_v31  ;;  %v1191_v35 = vld [vmem:[#allocation4 + $0x18] sm:$0xf] }
 0x2c8   :  { %v388_v38 = vmul.f32 0.015625, %v386_v36  ;;  %v1348_v34 = vor.u32 %v1473_v33, %v1347_v32  ;;  %606 = vmatpush.bf16.msra.mxu3 %v1208_v29  ;;  %v1434_v36 = vld [vmem:[#allocation4 + $0x20] sm:$0xf0]  ;;  %v1325_v31 = vld [vmem:[#allocation4 + $0x12c] sm:$0xf0]  ;;  %v1188_v32 = vor.u32 %v1432_v28, %v1187_v26 }
 0x2c9   :  { %403 = vadd.xlane.f32.xlu2 %v401_v37  ;;  %v1433_v37 = vld [vmem:[#allocation4 + $0x1c] sm:$0xf]  ;;  %v1466_v29 = vld [vmem:[#allocation4 + $0x124] sm:$0xf] }
 0x2ca   :  { %v1683_v45 = vsub.f32 %v372_v22, %v388_v38  ;;  %v1203_v22 = vld [vmem:[#allocation4 + $0x30] sm:$0xf]  ;;  %766 = vmatpush.bf16.msrb.mxu1 %v1348_v34  ;;  %v1192_v38 = vor.u32 %v1434_v36, %v1191_v35  ;;  %v1196_v42 = vor.u32 %v1433_v37, %v1193_v39  ;;  %v1328_v33 = vor.u32 %v1466_v29, %v1325_v31  ;;  %v1331_v34 = vld [vmem:[#allocation4 + $0x128] sm:$0xf]  ;;  %v1468_v35 = vld [vmem:[#allocation4 + $0x130] sm:$0xf0] }
 0x2cb   :  { %v1204_v25 = vor.u32 %v1437_v23, %v1203_v22  ;;  %618 = vmatpush.bf16.msrb.mxu0 %v1236_v43  ;;  %v1340_v22 = vor.u32 %v1469_v17, %v1337_v19  ;;  %v1344_v23 = vor.u32 %v1471_v21, %v1343_v20  ;;  %v1287_v36 = vld [vmem:[#allocation4 + $0xd8] sm:$0xf]  ;;  %v1332_v37 = vor.u32 %v1468_v35, %v1331_v34  ;;  %v435_v28 = vld [vmem:[%s1803_s1] sm:$0xff] }
 0x2cc   :  { %v392_v51 = vsel %vm59_vm0, %v1683_v45, 0.0  ;;  %607 = vmatpush.bf16.msra.mxu3 %v1196_v42  ;;  %v1284_v17 = vor.u32 %v1456_v12, %v1283_v11 }
 0x2cd   :  { %v396_v53 = vmul.f32 %v392_v51, %v392_v51  ;;  %v394_v54 = vsub.f32 %v1683_v45, %v392_v51  ;;  %592 = vmatpush.bf16.msra.mxu2 %v1204_v25  ;;  %v1180_v51 = vor.u32 %v1431_v49, %v1179_v48  ;;  %v1461_v25 = vld [vmem:[#allocation4 + $0xf8] sm:$0xf0]  ;;  %v1316_v49 = vor.u32 %v1463_v44, %v1313_v46 }
 0x2ce   :  { %767 = vmatpush.bf16.msrb.mxu1 %v1336_v47  ;;  %v1300_v27 = vor.u32 %v1461_v25, %v1299_v24  ;;  %v1319_v47 = vld [vmem:[#allocation4 + $0x110] sm:$0xf]  ;;  %v436_v25 = vld [vmem:[%s1803_s1 + $0x8] sm:$0xff] }
 0x2cf   :  { %399 = vadd.xlane.f32.xlu1 %v396_v53  ;;  %v402_v55 = vmul.f32 %v394_v54, %v394_v54  ;;  %v1223_v53 = vld [vmem:[#allocation4 + $0x50] sm:$0xf]  ;;  %v1441_v54 = vld [vmem:[#allocation4 + $0x58] sm:$0xf0] }
 0x2d1   :  { %405 = vadd.xlane.f32.xlu0 %v402_v55  ;;  %593 = vmatpush.bf16.msra.mxu2 %v1192_v38  ;;  %v1184_v55 = vor.u32 %v1430_v50, %v1181_v52  ;;  %v1458_v38 = vld [vmem:[#allocation4 + $0xe0] sm:$0xf0]  ;;  %v1465_v50 = vld [vmem:[#allocation4 + $0x118] sm:$0xf0] }
 0x2d2   :  { %768 = vmatpush.bf16.msrb.mxu1 %v1324_v1  ;;  %v1288_v41 = vor.u32 %v1458_v38, %v1287_v36  ;;  %v1320_v52 = vor.u32 %v1465_v50, %v1319_v47  ;;  %v1295_v1 = vld [vmem:[#allocation4 + $0xe0] sm:$0xf] }
 0x2d3   :  { %608 = vmatpush.bf16.msra.mxu3 %v1184_v55  ;;  %v1296_v6 = vor.u32 %v1459_v2, %v1295_v1 }
 0x2d5   :  { %594 = vmatpush.bf16.msra.mxu2 %v1180_v51  ;;  %v1275_v51 = vld [vmem:[#allocation4 + $0xc0] sm:$0xf] }
 0x2d6   :  { %769 = vmatpush.bf16.msrb.mxu1 %v1312_v14 }
 0x2d7   :  { %793 = vmatpush.bf16.msrb.mxu3 %v1368_v0 }
 0x2da   :  { %770 = vmatpush.bf16.msrb.mxu1 %v1300_v27 }
 0x2db   :  { %794 = vmatpush.bf16.msrb.mxu3 %v1356_v10 }
 0x2de   :  { %771 = vmatpush.bf16.msrb.mxu1 %v1288_v41 }
 0x2df   :  { %795 = vmatpush.bf16.msrb.mxu3 %v1344_v23 }
 0x2e1   :  { %446 = vperm.xlu2 %1486, %v438_v56   ;;  %v1224_v56 = vor.u32 %v1441_v54, %v1223_v53  ;;  %v1455_v53 = vld [vmem:[#allocation4 + $0xc8] sm:$0xf0]  ;;  %v1460_v54 = vld [vmem:[#allocation4 + $0xf4] sm:$0xf] }
 0x2e2   :  { %v1276_v55 = vor.u32 %v1455_v53, %v1275_v51 }
 0x2e3   :  { %619 = vmatpush.bf16.msrb.mxu0 %v1224_v56  ;;  %796 = vmatpush.bf16.msrb.mxu3 %v1332_v37  ;;  %v1301_v56 = vld [vmem:[#allocation4 + $0xfc] sm:$0xf0] }
 0x2e4   :  { %v1304_v59 = vor.u32 %v1460_v54, %v1301_v56  ;;  %772 = vmatpush.bf16.msrb.mxu1 %v1276_v55 }
 0x2e7   :  { %620 = vmatpush.bf16.msrb.mxu0 %v1212_v5  ;;  %797 = vmatpush.bf16.msrb.mxu3 %v1320_v52  ;;  %v1292_v5 = vor.u32 %v1457_v61, %v1289_v62 }
 0x2e8   :  { %441 = vperm.xlu1 %1485, %v437_v57   ;;  %v1475_v57 = vld [vmem:[#allocation4 + $0x16c] sm:$0xf] }
 0x2e9   :  { %v1364_v60 = vor.u32 %v1475_v57, %v1361_v58  ;;  %v1307_v57 = vld [vmem:[#allocation4 + $0xf8] sm:$0xf]  ;;  %v1462_v58 = vld [vmem:[#allocation4 + $0x100] sm:$0xf0] }
 0x2eb   :  { %779 = vmatpush.bf16.msrb.mxu2 %v1364_v60  ;;  %621 = vmatpush.bf16.msrb.mxu0 %v1200_v18  ;;  %v1308_v60 = vor.u32 %v1462_v58, %v1307_v57 }
 0x2ed   :  { %798 = vmatpush.bf16.msrb.mxu3 %v1308_v60 }
 0x2ef   :  { %780 = vmatpush.bf16.msrb.mxu2 %v1352_v9  ;;  %622 = vmatpush.bf16.msrb.mxu0 %v1188_v32 }
 0x2f1   :  { %799 = vmatpush.bf16.msrb.mxu3 %v1296_v6 }
 0x2f3   :  { %781 = vmatpush.bf16.msrb.mxu2 %v1340_v22 }
 0x2f5   :  { %800 = vmatpush.bf16.msrb.mxu3 %v1284_v17 }
 0x2f7   :  { %782 = vmatpush.bf16.msrb.mxu2 %v1328_v33 }
 0x2fb   :  { %783 = vmatpush.bf16.msrb.mxu2 %v1316_v49 }
 0x2ff   :  { %784 = vmatpush.bf16.msrb.mxu2 %v1304_v59 }
 0x303   :  { %785 = vmatpush.bf16.msrb.mxu2 %v1292_v5 }
 0x307   :  { %786 = vmatpush.bf16.msrb.mxu2 %v1280_v15 }
 0x33a   :  { %v398_v39 = vpop.xlane.xlu0 %397 }
 0x33c   :  { %v404_v40 = vpop.xlane.xlu2 %403 }
 0x33d   :  { %v407_v42 = vsel %vm59_vm0, %v398_v39, %v404_v40  ;;  %v1716_v40 = vld [vmem:[%s1807_s5 + $0x3] ss:$8 sm:$0x7] }
 0x33e   :  { %v409_v43 = vmul.f32 0.015625, %v407_v42  ;;  %v632_v58 = vperm.slane %v1716_v40, 1 }
 0x340   :  { %v411_v48 = vadd.f32 1e-05, %v409_v43 }
 0x342   :  { %1492 = vrsqrt.f32 %v411_v48  ;;  %v400_v63 = vpop.xlane.xlu1 %399  ;;  %vm419_vm8 = vweird.f32 %v411_v48 }
 0x344   :  { %v406_v0 = vpop.xlane.xlu0 %405  ;;  %v447_v26 = vpop.permute.xlu2 %446 }
 0x345   :  { %v408_v3 = vsel %vm59_vm0, %v400_v63, %v406_v0  ;;  %v1705_v29 = vmul.f32 %v447_v26, %v436_v25 }
 0x346   :  { %v410_v4 = vmul.f32 0.015625, %v408_v3 }
 0x348   :  { %v1493_v9 = vpop.eup %1492  ;;  %v412_v10 = vadd.f32 1e-05, %v410_v4 }
 0x349   :  { %v414_v14 = vmul.f32 %v1493_v9, %v411_v48  ;;  %vm420_vm7 = vweird.f32 %v1493_v9 }
 0x34a   :  { %1494 = vrsqrt.f32 %v412_v10  ;;  %vm421_vm10 = vmor %vm419_vm8, %vm420_vm7  ;;  %vm429_vm11 = vweird.f32 %v412_v10 }
 0x34b   :  { %v415_v16 = vmul.f32 %v1493_v9, %v414_v14 }
 0x34d   :  { %v416_v18 = vmul.f32 0.5, %v415_v16 }
 0x34f   :  { %v417_v20 = vsub.f32 1.5, %v416_v18 }
 0x350   :  { %v1495_v19 = vpop.eup %1494 }
 0x351   :  { %v424_v21 = vmul.f32 %v1495_v19, %v412_v10  ;;  %v418_v24 = vmul.f32 %v1493_v9, %v417_v20  ;;  %vm430_vm9 = vweird.f32 %v1495_v19 }
 0x352   :  { %vm431_vm12 = vmor %vm429_vm11, %vm430_vm9 }
 0x353   :  { %v425_v22 = vmul.f32 %v1495_v19, %v424_v21  ;;  %v422_v31 = vsel %vm421_vm10, %v1493_v9, %v418_v24  ;;  %v633_v21 = vperm.slane %v1716_v40, 2 }
 0x354   :  { %v433_v36 = vmul.f32 %v422_v31, %v1675_v30  ;;  %v631_v30 = vperm.slane %v1716_v40, 0 }
 0x355   :  { %v426_v23 = vmul.f32 0.5, %v425_v22 }
 0x357   :  { %v427_v27 = vsub.f32 1.5, %v426_v23 }
 0x359   :  { %v428_v32 = vmul.f32 %v1495_v19, %v427_v27 }
 0x35a   :  { %v442_v33 = vpop.permute.xlu1 %441 }
 0x35b   :  { %v432_v34 = vsel %vm431_vm12, %v1495_v19, %v428_v32  ;;  %v1707_v35 = vmul.f32 %v442_v33, %v435_v28 }
 0x35c   :  { %v434_v37 = vmul.f32 %v432_v34, %v1683_v45  ;;  %v1722_v45 = vld [vmem:[%s1807_s5 + $0x2] ss:$8 sm:$0x7] }
 0x35d   :  { %v629_v38 = vpack.c.bf16 %v1705_v29, %v1707_v35  ;;  %v453_v42 = vperm.slane %v1722_v45, 0  ;;  %v454_v56 = vperm.slane %v1722_v45, 1  ;;  %v455_v28 = vperm.slane %v1722_v45, 2 }
 0x35e   :  { %v451_v39 = vpack.c.bf16 %v434_v37, %v433_v36 }
 0x35f   :  { %773 = vmatmul.bf16.vlgmr.msrb.gmra.mxu1 %v629_v38 }
 0x360   :  { %595 = vmatmul.bf16.vlgmr.msra.gmra.mxu2 %v451_v39  ;;  %609 = vmatmul.bf16.vlgmr.msra.gmra.mxu3 %v451_v39 }
 0x361   :  { %623 = vmatmul.bf16.vlgmr.msrb.gmra.mxu0 %v451_v39 }
 0x370   :  { %787 = vmatmul.bf16.vlgmr.msrb.gmra.mxu2 %v629_v38  ;;  %801 = vmatmul.bf16.vlgmr.msrb.gmra.mxu3 %v629_v38 }
 0x3dc   :  { %v774_v41 = vpop.f32.mrf.mxu1 }
 0x3dd   :  { %v775_v43 = vadd.f32 %v774_v41, %v631_v30 }
 0x3de   :  { %v624_v25 = vpop.f32.mrf.mxu0 }
 0x3df   :  { %v625_v40 = vadd.f32 %v624_v25, %v455_v28 }
 0x3e3   :  { %v596_v44 = vpop.f32.mrf.mxu2  ;;  %v610_v52 = vpop.f32.mrf.mxu3 }
 0x3e4   :  { %v597_v46 = vadd.f32 %v596_v44, %v453_v42  ;;  %v776_v48 = vpop.f32.mrf.mxu1  ;;  %v611_v61 = vadd.f32 %v610_v52, %v454_v56 }
 0x3e5   :  { %v777_v50 = vadd.f32 %v776_v48, %v631_v30 }
 0x3e6   :  { %v807_v47 = vadd.f32 %v775_v43, %v597_v46 }
 0x3e8   :  { %v1369_v49 = vmul.f32 -1.442695, %v807_v47 }
 0x3ea   :  { %1496 = vpow2.f32 %v1369_v49 }
 0x3eb   :  { %v598_v51 = vpop.f32.mrf.mxu2  ;;  %v612_v63 = vpop.f32.mrf.mxu3 }
 0x3ec   :  { %v599_v53 = vadd.f32 %v598_v51, %v453_v42  ;;  %v613_v7 = vadd.f32 %v612_v63, %v454_v56 }
 0x3ee   :  { %v808_v54 = vadd.f32 %v777_v50, %v599_v53  ;;  %v626_v50 = vpop.f32.mrf.mxu0 }
 0x3ef   :  { %v627_v56 = vadd.f32 %v626_v50, %v455_v28  ;;  %v1423_v50 = vld [vmem:[#allocation2 + $0x88] sm:$0xff] }
 0x3f0   :  { %v1497_v55 = vpop.eup %1496  ;;  %v1370_v57 = vmul.f32 -1.442695, %v808_v54 }
 0x3f1   :  { %v815_v59 = vadd.f32 1.0, %v1497_v55 }
 0x3f2   :  { %1498 = vpow2.f32 %v1370_v57 }
 0x3f3   :  { %1500 = vrcp.f32 %v815_v59  ;;  %v788_v60 = vpop.f32.mrf.mxu2  ;;  %v828_v11 = vand.u32 2147483648, %v815_v59  ;;  %v826_v14 = vand.u32 2147483647, %v815_v59  ;;  %v802_v16 = vpop.f32.mrf.mxu3  ;;  %vm822_vm14 = vweird.f32 %v815_v59 }
 0x3f4   :  { %v789_v62 = vadd.f32 %v788_v60, %v632_v58  ;;  %v803_v31 = vadd.f32 %v802_v16, %v633_v21 }
 0x3f5   :  { %v829_v23 = vor.u32 1.1754944e-38, %v828_v11  ;;  %vm827_vm1 = vcmp.eq.f32.partialorder %v826_v14, 8.507059e+37 }
 0x3f6   :  { %v847_v0 = vadd.f32 %v789_v62, %v611_v61 }
 0x3f8   :  { %v1499_v1 = vpop.eup %1498  ;;  %v1371_v2 = vmul.f32 -1.442695, %v847_v0 }
 0x3f9   :  { %v1501_v3 = vpop.eup %1500  ;;  %v816_v4 = vadd.f32 1.0, %v1499_v1 }
 0x3fa   :  { %1502 = vpow2.f32 %v1371_v2  ;;  %v818_v5 = vmul.f32 %v1501_v3, %v815_v59  ;;  %vm823_vm13 = vweird.f32 %v1501_v3 }
 0x3fb   :  { %1504 = vrcp.f32 %v816_v4  ;;  %v790_v6 = vpop.f32.mrf.mxu2  ;;  %vm824_vm15 = vmor %vm822_vm14, %vm823_vm13  ;;  %v843_v33 = vand.u32 2147483648, %v816_v4  ;;  %v841_v36 = vand.u32 2147483647, %v816_v4  ;;  %vm837_vm3 = vweird.f32 %v816_v4  ;;  %v804_v42 = vpop.f32.mrf.mxu3 }
 0x3fc   :  { %v819_v8 = vsub.f32 1.0, %v818_v5  ;;  %v791_v9 = vadd.f32 %v790_v6, %v632_v58  ;;  %v805_v48 = vadd.f32 %v804_v42, %v633_v21  ;;  %v1426_v42 = vld [vmem:[#allocation2 + $0xa0] sm:$0xff] }
 0x3fd   :  { %v844_v44 = vor.u32 1.1754944e-38, %v843_v33  ;;  %vm842_vm5 = vcmp.eq.f32.partialorder %v841_v36, 8.507059e+37 }
 0x3fe   :  { %v820_v10 = vmul.f32 %v1501_v3, %v819_v8  ;;  %v848_v12 = vadd.f32 %v791_v9, %v613_v7 }
 0x400   :  { %v1503_v15 = vpop.eup %1502  ;;  %v821_v17 = vadd.f32 %v1501_v3, %v820_v10  ;;  %v1372_v18 = vmul.f32 -1.442695, %v848_v12 }
 0x401   :  { %v1505_v19 = vpop.eup %1504  ;;  %v855_v20 = vadd.f32 1.0, %v1503_v15 }
 0x402   :  { %v825_v22 = vsel %vm824_vm15, %v1501_v3, %v821_v17  ;;  %1506 = vpow2.f32 %v1372_v18  ;;  %v833_v24 = vmul.f32 %v1505_v19, %v816_v4  ;;  %vm838_vm2 = vweird.f32 %v1505_v19 }
 0x403   :  { %1508 = vrcp.f32 %v855_v20  ;;  %v830_v26 = vsel %vm827_vm1, %v829_v23, %v825_v22  ;;  %vm839_vm4 = vmor %vm837_vm3, %vm838_vm2  ;;  %v868_v49 = vand.u32 2147483648, %v855_v20  ;;  %v866_v52 = vand.u32 2147483647, %v855_v20 }
 0x404   :  { %v834_v27 = vsub.f32 1.0, %v833_v24  ;;  %v887_v34 = vmul.f32 %v830_v26, %v803_v31  ;;  %vm862_vm7 = vweird.f32 %v855_v20 }
 0x405   :  { %v869_v57 = vor.u32 1.1754944e-38, %v868_v49  ;;  %vm867_vm9 = vcmp.eq.f32.partialorder %v866_v52, 8.507059e+37 }
 0x406   :  { %v835_v32 = vmul.f32 %v1505_v19, %v834_v27  ;;  %v889_v46 = vadd.f32 %v887_v34, %v625_v40  ;;  %v1429_v40 = vld [vmem:[#allocation2 + $0xb8] sm:$0xff] }
 0x407   :  { %1014 = vmatpush.bf16.msra.mxu0 %v1429_v40 }
 0x408   :  { %v1507_v37 = vpop.eup %1506  ;;  %v836_v38 = vadd.f32 %v1505_v19, %v835_v32 }
 0x409   :  { %v1509_v39 = vpop.eup %1508  ;;  %v856_v41 = vadd.f32 1.0, %v1507_v37 }
 0x40a   :  { %v858_v30 = vmul.f32 %v1509_v39, %v855_v20  ;;  %v840_v43 = vsel %vm839_vm4, %v1505_v19, %v836_v38  ;;  %vm863_vm6 = vweird.f32 %v1509_v39  ;;  %vm1028_vm4 = vcmp.ge.s32.totalorder %v1642_v13, 24 }
 0x40b   :  { %1510 = vrcp.f32 %v856_v41  ;;  %v845_v47 = vsel %vm842_vm5, %v844_v44, %v840_v43  ;;  %vm864_vm8 = vmor %vm862_vm7, %vm863_vm6  ;;  %v881_v1 = vand.u32 2147483647, %v856_v41  ;;  %v883_v2 = vand.u32 2147483648, %v856_v41  ;;  %v1425_v43 = vld [vmem:[#allocation2 + $0x98] sm:$0xff] }
 0x40c   :  { %v859_v45 = vsub.f32 1.0, %v858_v30  ;;  %1512 = vtanh.f32 %v889_v46  ;;  %v888_v53 = vmul.f32 %v845_v47, %v805_v48  ;;  %vm877_vm11 = vweird.f32 %v856_v41  ;;  %v1427_v30 = vld [vmem:[#allocation2 + $0xa8] sm:$0xff] }
 0x40d   :  { %v884_v8 = vor.u32 1.1754944e-38, %v883_v2  ;;  %vm882_vm13 = vcmp.eq.f32.partialorder %v881_v1, 8.507059e+37  ;;  %vm1029_vm5 = vcmp.lt.s32.totalorder %v1642_v13, 29 }
 0x40e   :  { %v860_v51 = vmul.f32 %v1509_v39, %v859_v45  ;;  %v890_v60 = vadd.f32 %v888_v53, %v627_v56  ;;  %v1424_v45 = vld [vmem:[#allocation2 + $0x90] sm:$0xff]  ;;  %vm1763_vm6 = vmand %vm1028_vm4, %vm1029_vm5 }
 0x410   :  { %v861_v54 = vadd.f32 %v1509_v39, %v860_v51  ;;  %1514 = vtanh.f32 %v890_v60  ;;  %v1422_v51 = vld [vmem:[#allocation2 + $0x80] sm:$0xff] }
 0x411   :  { %v1511_v55 = vpop.eup %1510 }
 0x412   :  { %v873_v58 = vmul.f32 %v1511_v55, %v856_v41  ;;  %v865_v59 = vsel %vm864_vm8, %v1509_v39, %v861_v54  ;;  %v1513_v0 = vpop.eup %1512  ;;  %vm878_vm10 = vweird.f32 %v1511_v55  ;;  %v1428_v41 = vld [vmem:[#allocation2 + $0xb0] sm:$0xff] }
 0x413   :  { %v870_v61 = vsel %vm867_vm9, %v869_v57, %v865_v59  ;;  %vm879_vm12 = vmor %vm877_vm11, %vm878_vm10  ;;  %1015 = vmatpush.bf16.msra.mxu0 %v1428_v41  ;;  %vm1092_vm11 = vcmp.lt.s32.totalorder %v1642_v13, 24 }
 0x414   :  { %v874_v62 = vsub.f32 1.0, %v873_v58  ;;  %v893_v63 = vsub.f32 1.0, %v870_v61  ;;  %v897_v4 = vmul.f32 %v870_v61, %v1707_v35 }
 0x416   :  { %v895_v3 = vmul.f32 %v1513_v0, %v893_v63  ;;  %v875_v5 = vmul.f32 %v1511_v55, %v874_v62  ;;  %v1515_v12 = vpop.eup %1514 }
 0x417   :  { %1016 = vmatpush.bf16.msra.mxu0 %v1427_v30 }
 0x418   :  { %v899_v6 = vadd.f32 %v897_v4, %v895_v3  ;;  %v876_v7 = vadd.f32 %v1511_v55, %v875_v5 }
 0x41a   :  { %v903_v9 = vsel %vm59_vm0, %v899_v6, 0.0  ;;  %901 = vst [vmem:[%s1809_s7] sm:$0xff] %v899_v6  ;;  %v880_v10 = vsel %vm879_vm12, %v1511_v55, %v876_v7  ;;  %vm1091_vm12 = vcmp.eq.s32.totalorder %v1642_v13, 1 }
 0x41b   :  { %907 = vadd.xlane.f32.xlu0 %v903_v9  ;;  %v885_v11 = vsel %vm882_vm13, %v884_v8, %v880_v10  ;;  %v905_v19 = vsub.f32 %v899_v6, %v903_v9  ;;  %1017 = vmatpush.bf16.msra.mxu0 %v1426_v42  ;;  %v178_v10 = vld [vmem:[%s1807_s5 + $0x4] ss:$0 sm:$0xff]  ;;  %vm1090_vm13 = vcmp.eq.s32.totalorder %v1642_v13, 0 }
 0x41c   :  { %v894_v35 = vsub.f32 1.0, %v885_v11  ;;  %v898_v15 = vmul.f32 %v885_v11, %v1705_v29 }
 0x41e   :  { %v896_v14 = vmul.f32 %v1515_v12, %v894_v35 }
 0x41f   :  { %1018 = vmatpush.bf16.msra.mxu0 %v1425_v43 }
 0x420   :  { %v900_v16 = vadd.f32 %v898_v15, %v896_v14 }
 0x422   :  { %902 = vst [vmem:[%s1809_s7 + $0x8] sm:$0xff] %v900_v16  ;;  %v904_v17 = vsel %vm59_vm0, %v900_v16, 0.0 }
 0x423   :  { %909 = vadd.xlane.f32.xlu0 %v904_v17  ;;  %v906_v18 = vsub.f32 %v900_v16, %v904_v17  ;;  %1019 = vmatpush.bf16.msra.mxu0 %v1424_v45 }
 0x425   :  { %913 = vadd.xlane.f32.xlu2 %v906_v18  ;;  %v1405_v18 = vadd.s32 4294967272, %v1642_v13 }
 0x427   :  { %1020 = vmatpush.bf16.msra.mxu0 %v1423_v50 }
 0x42b   :  { %911 = vadd.xlane.f32.xlu0 %v905_v19  ;;  %1021 = vmatpush.bf16.msra.mxu0 %v1422_v51 }
 0x48e   :  { %v908_v20 = vpop.xlane.xlu0 %907 }
 0x496   :  { %v910_v21 = vpop.xlane.xlu0 %909 }
 0x498   :  { %v914_v22 = vpop.xlane.xlu2 %913 }
 0x499   :  { %v916_v25 = vsel %vm59_vm0, %v910_v21, %v914_v22 }
 0x49a   :  { %v918_v27 = vmul.f32 0.015625, %v916_v25 }
 0x49c   :  { %v920_v34 = vsub.f32 %v900_v16, %v918_v27 }
 0x49e   :  { %v912_v23 = vpop.xlane.xlu0 %911  ;;  %v922_v36 = vsel %vm59_vm0, %v920_v34, 0.0 }
 0x49f   :  { %v915_v29 = vsel %vm59_vm0, %v908_v20, %v912_v23  ;;  %v926_v37 = vmul.f32 %v922_v36, %v922_v36  ;;  %v924_v38 = vsub.f32 %v920_v34, %v922_v36 }
 0x4a0   :  { %v917_v24 = vmul.f32 0.015625, %v915_v29 }
 0x4a1   :  { %v932_v39 = vmul.f32 %v924_v38, %v924_v38 }
 0x4a2   :  { %v1745_v26 = vsub.f32 %v899_v6, %v917_v24 }
 0x4a4   :  { %v921_v28 = vsel %vm59_vm0, %v1745_v26, 0.0 }
 0x4a5   :  { %v925_v31 = vmul.f32 %v921_v28, %v921_v28  ;;  %v923_v32 = vsub.f32 %v1745_v26, %v921_v28 }
 0x4a7   :  { %927 = vadd.xlane.f32.xlu1 %v925_v31  ;;  %v931_v33 = vmul.f32 %v923_v32, %v923_v32 }
 0x4a9   :  { %933 = vadd.xlane.f32.xlu0 %v931_v33 }
 0x4b1   :  { %929 = vadd.xlane.f32.xlu0 %v926_v37 }
 0x4b9   :  { %935 = vadd.xlane.f32.xlu0 %v932_v39 }
 0x51a   :  { %v928_v44 = vpop.xlane.xlu1 %927 }
 0x51c   :  { %v934_v46 = vpop.xlane.xlu0 %933 }
 0x51d   :  { %v937_v47 = vsel %vm59_vm0, %v928_v44, %v934_v46 }
 0x51e   :  { %v939_v48 = vmul.f32 0.015625, %v937_v47 }
 0x520   :  { %v941_v49 = vadd.f32 1e-05, %v939_v48 }
 0x522   :  { %1516 = vrsqrt.f32 %v941_v49  ;;  %vm949_vm15 = vweird.f32 %v941_v49 }
 0x524   :  { %v930_v52 = vpop.xlane.xlu0 %929 }
 0x528   :  { %v1517_v53 = vpop.eup %1516 }
 0x529   :  { %v944_v55 = vmul.f32 %v1517_v53, %v941_v49  ;;  %vm950_vm14 = vweird.f32 %v1517_v53 }
 0x52a   :  { %vm951_vm2 = vmor %vm949_vm15, %vm950_vm14 }
 0x52b   :  { %v945_v59 = vmul.f32 %v1517_v53, %v944_v55 }
 0x52c   :  { %v936_v54 = vpop.xlane.xlu0 %935 }
 0x52d   :  { %v938_v56 = vsel %vm59_vm0, %v930_v52, %v936_v54  ;;  %v946_v60 = vmul.f32 0.5, %v945_v59 }
 0x52e   :  { %v940_v57 = vmul.f32 0.015625, %v938_v56 }
 0x52f   :  { %v947_v62 = vsub.f32 1.5, %v946_v60 }
 0x530   :  { %v942_v58 = vadd.f32 1e-05, %v940_v57 }
 0x531   :  { %v948_v1 = vmul.f32 %v1517_v53, %v947_v62 }
 0x532   :  { %1518 = vrsqrt.f32 %v942_v58  ;;  %vm959_vm3 = vweird.f32 %v942_v58 }
 0x533   :  { %v952_v4 = vsel %vm951_vm2, %v1517_v53, %v948_v1 }
 0x534   :  { %v963_v7 = vmul.f32 %v952_v4, %v1745_v26 }
 0x538   :  { %v1519_v61 = vpop.eup %1518 }
 0x539   :  { %v954_v63 = vmul.f32 %v1519_v61, %v942_v58  ;;  %vm960_vm1 = vweird.f32 %v1519_v61 }
 0x53a   :  { %vm961_vm0 = vmor %vm959_vm3, %vm960_vm1 }
 0x53b   :  { %v955_v0 = vmul.f32 %v1519_v61, %v954_v63 }
 0x53d   :  { %v956_v2 = vmul.f32 0.5, %v955_v0 }
 0x53f   :  { %v957_v3 = vsub.f32 1.5, %v956_v2 }
 0x541   :  { %v958_v5 = vmul.f32 %v1519_v61, %v957_v3 }
 0x543   :  { %v962_v6 = vsel %vm961_vm0, %v1519_v61, %v958_v5 }
 0x544   :  { %v964_v8 = vmul.f32 %v962_v6, %v920_v34 }
 0x546   :  { %v965_v9 = vpack.c.bf16 %v964_v8, %v963_v7 }
 0x548   :  { %1022 = vmatmul.bf16.vlgmr.msra.gmra.mxu0 %v965_v9 }
 0x5c5   :  { %v1023_v11 = vpop.f32.mrf.mxu0 }
 0x5c6   :  { %v1024_v12 = vadd.f32 %v1023_v11, %v178_v10 }
 0x5c8   :  { %v1031_v14 = vsel %vm1763_vm6, %v1024_v12, -inf  ;;  %v1093_v55 = vsel %vm1092_vm11, %v1024_v12, 0.0 }
 0x5c9   :  { %1033 = vmax.xlane.f32.xlu0 %v1031_v14 }
 0x5cd   :  { %v1025_v15 = vpop.f32.mrf.mxu0 }
 0x5ce   :  { %v1769_v16 = vadd.f32 %v1025_v15, %v178_v10 }
 0x5d0   :  { %v1032_v17 = vsel %vm1763_vm6, %v1769_v16, -inf  ;;  %v1094_v2 = vsel %vm1092_vm11, %v1769_v16, 0.0 }
 0x5d1   :  { %1035 = vmax.xlane.f32.xlu0 %v1032_v17 }
 0x63c   :  { %v1034_v19 = vpop.xlane.xlu0 %1033 }
 0x63d   :  { %v1037_v20 = vsub.f32 %v1024_v12, %v1034_v19  ;;  %vm1049_vm7 = vcmp.ge.f32.partialorder %v1031_v14, %v1034_v19 }
 0x63e   :  { %v1052_v21 = vsel %vm1049_vm7, %v1405_v18, 5 }
 0x63f   :  { %v1039_v22 = vsel %vm1763_vm6, %v1037_v20, -inf  ;;  %v1055_v23 = vshra.s32 %v1052_v21, 16  ;;  %v1054_v37 = vand.u32 65535, %v1052_v21 }
 0x640   :  { %v1041_v29 = vmul.f32 1.442695, %v1039_v22 }
 0x641   :  { %v1057_v24 = vcvt.s32.f32 %v1055_v23  ;;  %v1056_v39 = vcvt.s32.f32 %v1054_v37 }
 0x642   :  { %1520 = vpow2.f32 %v1041_v29 }
 0x643   :  { %1058 = vmin.xlane.f32.xlu2 %v1057_v24 }
 0x644   :  { %v1036_v25 = vpop.xlane.xlu0 %1035 }
 0x645   :  { %v1038_v26 = vsub.f32 %v1769_v16, %v1036_v25  ;;  %vm1050_vm8 = vcmp.ge.f32.partialorder %v1032_v17, %v1036_v25 }
 0x646   :  { %v1053_v27 = vsel %vm1050_vm8, %v1405_v18, 5 }
 0x647   :  { %v1040_v28 = vsel %vm1763_vm6, %v1038_v26, -inf  ;;  %v1069_v31 = vshra.s32 %v1053_v27, 16  ;;  %v1068_v41 = vand.u32 65535, %v1053_v27 }
 0x648   :  { %v1521_v32 = vpop.eup %1520  ;;  %v1043_v33 = vmul.f32 1.442695, %v1040_v28 }
 0x649   :  { %1045 = vadd.xlane.f32.xlu0 %v1521_v32  ;;  %v1071_v34 = vcvt.s32.f32 %v1069_v31  ;;  %v1070_v42 = vcvt.s32.f32 %v1068_v41 }
 0x64a   :  { %1522 = vpow2.f32 %v1043_v33 }
 0x64b   :  { %1072 = vmin.xlane.f32.xlu1 %v1071_v34 }
 0x650   :  { %v1523_v36 = vpop.eup %1522 }
 0x651   :  { %1047 = vadd.xlane.f32.xlu2 %v1523_v36 }
 0x6b6   :  { %v1059_v38 = vpop.xlane.xlu2 %1058 }
 0x6b7   :  { %vm1060_vm9 = vcmp.eq.f32.partialorder %v1057_v24, %v1059_v38  ;;  %v1065_v47 = vcvt.f32.s32 %v1059_v38 }
 0x6b8   :  { %v1061_v40 = vsel %vm1060_vm9, %v1056_v39, inf }
 0x6b9   :  { %1062 = vmin.xlane.f32.xlu1 %v1061_v40  ;;  %v1066_v50 = vshll.u32 %v1065_v47, 16 }
 0x6bc   :  { %v1046_v44 = vpop.xlane.xlu0 %1045 }
 0x6bd   :  { %1524 = vlog2.f32 %v1046_v44 }
 0x6be   :  { %v1073_v30 = vpop.xlane.xlu1 %1072 }
 0x6bf   :  { %vm1074_vm10 = vcmp.eq.f32.partialorder %v1071_v34, %v1073_v30  ;;  %v1079_v56 = vcvt.f32.s32 %v1073_v30 }
 0x6c0   :  { %v1075_v43 = vsel %vm1074_vm10, %v1070_v42, inf }
 0x6c1   :  { %1076 = vmin.xlane.f32.xlu0 %v1075_v43  ;;  %v1080_v62 = vshll.u32 %v1079_v56, 16 }
 0x6c3   :  { %v1525_v45 = vpop.eup %1524 }
 0x6c4   :  { %v1048_v46 = vpop.xlane.xlu2 %1047  ;;  %v1085_v48 = vmul.f32 0.6931472, %v1525_v45 }
 0x6c5   :  { %1526 = vlog2.f32 %v1048_v46 }
 0x6c6   :  { %v1088_v52 = vsub.f32 0.0, %v1085_v48 }
 0x6c8   :  { %v1095_v58 = vsel %vm1091_vm12, %v1088_v52, %v1093_v55 }
 0x6cb   :  { %v1527_v53 = vpop.eup %1526 }
 0x6cc   :  { %v1087_v59 = vmul.f32 0.6931472, %v1527_v53 }
 0x6ce   :  { %v1089_v0 = vsub.f32 0.0, %v1087_v59 }
 0x6d0   :  { %v1096_v4 = vsel %vm1091_vm12, %v1089_v0, %v1094_v2 }
 0x72c   :  { %v1063_v49 = vpop.xlane.xlu1 %1062 }
 0x72d   :  { %v1064_v51 = vcvt.f32.s32 %v1063_v49 }
 0x72f   :  { %v1067_v54 = vadd.s32 %v1066_v50, %v1064_v51 }
 0x731   :  { %v1082_v57 = vcvt.s32.f32 %v1067_v54 }
 0x733   :  { %v1097_v60 = vsel %vm1090_vm13, %v1082_v57, %v1095_v58 }
 0x734   :  { %1099 = vst [vmem:[%s1808_s6] sm:$0xff] %v1097_v60  ;;  %v1077_v61 = vpop.xlane.xlu0 %1076 }
 0x735   :  { %v1078_v63 = vcvt.f32.s32 %v1077_v61 }
 0x737   :  { %v1081_v1 = vadd.s32 %v1080_v62, %v1078_v63 }
 0x739   :  { %v1083_v3 = vcvt.s32.f32 %v1081_v1 }
 0x73b   :  { %v1098_v5 = vsel %vm1090_vm13, %v1083_v3, %v1096_v4 }
 0x73c   :  { %1100 = vst [vmem:[%s1808_s6 + $0x8] sm:$0xff] %v1098_v5 }
 0x73d   :  { %1109 = vsyncpa [#allocation3], 1 }
 0x73e   :  { %1110 = vsyncpa [#allocation5], 1 }

</bundles_post_ra>
